<compile_context>
chip_gen: v6e
topology: v6e:2x2x1
jax: 0.10.0
libtpu: 0.0.40
codegen_flags: <defaults>
</compile_context>

<pallas_src>
import jax
import jax.numpy as jnp
import numpy as np
from jax.experimental import pallas as pl
from jax.experimental.pallas import tpu as pltpu

EMBED = 32
HEADS = 4
HEAD_DIM = EMBED // HEADS
GROUP = EMBED // HEAD_DIM          # == HEADS: head_dim segments per embed row
FF_DIM = 64
LN_EPS = 1e-5

_VMEM = pltpu.MemorySpace.VMEM


# ----------------------------- in-kernel helpers ---------------------------

def _dot(a, b):
    return jnp.dot(a, b, preferred_element_type=jnp.float32)


def _dot_nt(a, b):
    # a @ b.T without materializing an in-kernel transpose.
    return jax.lax.dot_general(a, b, (((1,), (1,)), ((), ())),
                               preferred_element_type=jnp.float32)


def _layer_norm(h, g, b):
    mu = jnp.mean(h, axis=-1, keepdims=True)
    var = jnp.mean((h - mu) ** 2, axis=-1, keepdims=True)
    return (h - mu) * jax.lax.rsqrt(var + LN_EPS) * g + b


def _mha(kv, q_in, picks, head_sum, wk_t, wq_t, wvo, bo):
    """torch SelfAttention.forward for ONE batch (all operands 2D slabs).

    kv:       (Lk, E) tokens feeding the key/value projections
    q_in:     (Lq, E) tokens feeding the query projection
    picks:    (GROUP, Lq, HEADS*Lq) constant 0/1 matrices reproducing torch's
              quirky (H, Lq, hd) -> (Lq, E) reshape inside fc_out
    head_sum: (HEADS*Lk, HEADS*Lk) constant block-diag ones matrix turning the
              per-head softmax denominator into one MXU op
    wk_t/wq_t:(E, E) pre-transposed projections (1/sqrt(E) folded into wq_t)
    wvo:      (E, HEADS*GROUP*E) host-precomposed Wv . Wo product: lane block
              [h*GROUP*E + s*E : ... + E] of (kv @ wvo) equals V_h @ Wo_seg_s
    bo:       (1, E) fc_out bias
    """
    lk = kv.shape[0]
    wide = GROUP * EMBED

    k = _dot(kv, wk_t)        # (Lk, E)
    q = _dot(q_in, wq_t)      # (Lq, E), already scaled by 1/sqrt(E)
    vw = _dot(kv, wvo)        # (Lk, HEADS*GROUP*E): fused V-proj + fc_out segs

    # Per-head scores stacked along lanes: (Lq, HEADS*Lk).
    sc = jnp.concatenate(
        [_dot_nt(q[:, h * HEAD_DIM:(h + 1) * HEAD_DIM],
                 k[:, h * HEAD_DIM:(h + 1) * HEAD_DIM]) for h in range(HEADS)],
        axis=1)

    # Single softmax for all heads: the full-row max is a per-row constant
    # shift that cancels inside every head block, so each head's softmax is
    # unchanged (and numerically safe).  One exp, one block-sum matmul.
    p = jnp.exp(sc - jnp.max(sc, axis=-1, keepdims=True))
    denom = _dot(p, head_sum)            # per-head block sums, broadcast
    probs = p / denom                    # exact divide: keeps 1e-4 tolerance

    # mwide row t = h*Lq + lq, lane block s  ==  (A_h @ Wo_seg_s)[lq, :]
    mwide = jnp.concatenate(
        [_dot(probs[:, h * lk:(h + 1) * lk], vw[:, h * wide:(h + 1) * wide])
         for h in range(HEADS)],
        axis=0)                          # (HEADS*Lq, GROUP*E), lane-dense

    # fc_out with torch's scrambled reshape folded into constant pick matmuls:
    # out[l, :] = bo + sum_s mwide[GROUP*l + s, s*E:(s+1)*E]
    out = bo
    for s in range(GROUP):
        out = out + _dot(picks[s], mwide[:, s * EMBED:(s + 1) * EMBED])
    return out


# ------------------------------ fused kernel -------------------------------

def _decoder_block_kernel(
    x_ref, enc_ref, picks_ref, hsum_ref,
    sa_wk_ref, sa_wq_ref, sa_wvo_ref, sa_bo_ref,
    ln_g_ref, ln_b_ref,
    tb_wk_ref, tb_wq_ref, tb_wvo_ref, tb_bo_ref,
    ln1_g_ref, ln1_b_ref, ln2_g_ref, ln2_b_ref,
    w1_ref, b1_ref, w2_ref, b2_ref,
    o_ref,
):
    x = x_ref[0]            # (L, E) tokens of this batch
    enc = enc_ref[0]        # (L, E)
    picks = picks_ref[...]
    hsum = hsum_ref[...]

    # --- decoder self attention (q = k = v = x) + residual + LayerNorm -----
    attn1 = _mha(x, x, picks, hsum,
                 sa_wk_ref[...], sa_wq_ref[...], sa_wvo_ref[...], sa_bo_ref[...])
    h1 = _layer_norm(x + attn1, ln_g_ref[...], ln_b_ref[...])

    # --- transformer block: cross attention (k = v = enc, q = h1) ----------
    attn2 = _mha(enc, h1, picks, hsum,
                 tb_wk_ref[...], tb_wq_ref[...], tb_wvo_ref[...], tb_bo_ref[...])
    h2 = _layer_norm(h1 + attn2, ln1_g_ref[...], ln1_b_ref[...])

    # --- ReLU feed-forward + residual + LayerNorm ---------------------------
    ff = jnp.maximum(_dot(h2, w1_ref[...]) + b1_ref[...], 0.0)
    ff = _dot(ff, w2_ref[...]) + b2_ref[...]
    o_ref[0] = _layer_norm(h2 + ff, ln2_g_ref[...], ln2_b_ref[...])


# ------------------------------- wrappers -----------------------------------

def _attn_constants(l):
    """Per-program trace-time constants (O(L^2), independent of batch size N)."""
    hl = HEADS * l
    t = np.arange(hl)
    head_sum = (t[:, None] // l == t[None, :] // l).astype(np.float32)  # (H*L, H*L)
    picks = np.zeros((GROUP, l, hl), np.float32)
    rows = np.arange(l)
    for s in range(GROUP):
        picks[s, rows, GROUP * rows + s] = 1.0
    return picks, head_sum


def prepare_kernel_params(params):
    """One-time host-side weight prep (exact float64 numpy, cast to f32):
       transpose nn.Linear weights to (in, out), fold the 1/sqrt(E) scale into
       the query projection, and pre-compose Wv with the segment-reordered
       fc_out weight so the value projection + fc_out become wide matmuls."""
    inv_scale = 1.0 / float(EMBED) ** 0.5

    def attn(a):
        wo_t = np.asarray(a["wo"]).astype(np.float64).T                 # (E, E)
        # wo_wide[d, s*E + o] = wo_t[s*hd + d, o]
        wo_wide = wo_t.reshape(GROUP, HEAD_DIM, EMBED).transpose(1, 0, 2) \
                      .reshape(HEAD_DIM, GROUP * EMBED)
        wv_t = np.asarray(a["wv"]).astype(np.float64).T                 # (E, E)
        wvo = np.concatenate(
            [wv_t[:, h * HEAD_DIM:(h + 1) * HEAD_DIM] @ wo_wide
             for h in range(HEADS)], axis=1)                            # (E, H*GROUP*E)
        wq_t = np.asarray(a["wq"]).astype(np.float64).T * inv_scale
        return {"wk_t": jnp.asarray(np.asarray(a["wk"]).T, jnp.float32),
                "wq_t": jnp.asarray(wq_t, jnp.float32),
                "wvo": jnp.asarray(wvo, jnp.float32),
                "bo": jnp.asarray(a["bo"]).reshape(1, -1)}

    tb = params["tb"]
    return {
        "sa": attn(params["self_attn"]),
        "ln_g": params["ln_g"].reshape(1, -1), "ln_b": params["ln_b"].reshape(1, -1),
        "tba": attn(tb["attn"]),
        "ln1_g": tb["ln1_g"].reshape(1, -1), "ln1_b": tb["ln1_b"].reshape(1, -1),
        "ln2_g": tb["ln2_g"].reshape(1, -1), "ln2_b": tb["ln2_b"].reshape(1, -1),
        "w1_t": tb["w1"].T, "b1": tb["b1"].reshape(1, -1),
        "w2_t": tb["w2"].T, "b2": tb["b2"].reshape(1, -1),
    }


def _fixed_spec(shape):
    """Whole-array VMEM-resident operand (same block for every grid step)."""
    nd = len(shape)
    return pl.BlockSpec(tuple(shape), lambda b: (0,) * nd, memory_space=_VMEM)


@jax.jit
def decoder_block(kp, x, enc_out):
    n, l, e = x.shape
    assert e == EMBED and enc_out.shape == x.shape

    picks, head_sum = _attn_constants(l)   # baked as constants at trace time

    tok_spec = pl.BlockSpec((1, l, e), lambda b: (b, 0, 0), memory_space=_VMEM)

    weight_args = (
        jnp.asarray(picks), jnp.asarray(head_sum),
        kp["sa"]["wk_t"], kp["sa"]["wq_t"], kp["sa"]["wvo"], kp["sa"]["bo"],
        kp["ln_g"], kp["ln_b"],
        kp["tba"]["wk_t"], kp["tba"]["wq_t"], kp["tba"]["wvo"], kp["tba"]["bo"],
        kp["ln1_g"], kp["ln1_b"], kp["ln2_g"], kp["ln2_b"],
        kp["w1_t"], kp["b1"], kp["w2_t"], kp["b2"],
    )

    # Advisory cost estimate (per call).
    mha_macs = (2 * l * e * e                      # K, Q projections
                + l * e * (HEADS * GROUP * e)      # fused V . Wo matmul
                + HEADS * l * l * HEAD_DIM         # per-head scores
                + l * (HEADS * l) * (HEADS * l)    # softmax denominator matmul
                + HEADS * l * l * (GROUP * e)      # per-head probs . (V.Wo)
                + GROUP * l * (HEADS * l) * e)     # pick matmuls
    ffn_macs = 2 * l * e * FF_DIM
    cost = pl.CostEstimate(
        flops=2 * n * (2 * mha_macs + ffn_macs),
        transcendentals=2 * n * l * HEADS * l,
        bytes_accessed=4 * (3 * n * l * e + sum(int(a.size) for a in weight_args)),
    )

    out = pl.pallas_call(
        _decoder_block_kernel,
        out_shape=jax.ShapeDtypeStruct((n, l, e), jnp.float32),
        grid=(n,),
        in_specs=[tok_spec, tok_spec] + [_fixed_spec(a.shape) for a in weight_args],
        out_specs=tok_spec,
        compiler_params=pltpu.CompilerParams(
            dimension_semantics=("parallel",),        # v7x megacore shards batches
            vmem_limit_bytes=32 * 1024 * 1024),
        cost_estimate=cost,
    )(x, enc_out, *weight_args)
    return out


# --------------------------- pure-JAX reference ------------------------------

def _ref_ln(x, g, b):
    mu = x.mean(-1, keepdims=True)
    var = ((x - mu) ** 2).mean(-1, keepdims=True)
    return (x - mu) / jnp.sqrt(var + LN_EPS) * g + b


def _ref_self_attention(p, values, keys, queries):
    n, lq, e = queries.shape
    lk, lv = keys.shape[1], values.shape[1]
    v = values @ p["wv"].T
    k = keys @ p["wk"].T
    q = queries @ p["wq"].T
    v = v.reshape(n, lv, HEADS, HEAD_DIM).transpose(0, 2, 1, 3)
    k = k.reshape(n, lk, HEADS, HEAD_DIM).transpose(0, 2, 3, 1)
    q = q.reshape(n, lq, HEADS, HEAD_DIM).transpose(0, 2, 1, 3)
    scores = jax.nn.softmax((q @ k) / (e ** 0.5), axis=-1)
    attn = (scores @ v).reshape(n, lq, e)     # the torch quirk (no head un-permute)
    return attn @ p["wo"].T + p["bo"]


def _ref_transformer_block(p, x, value, key, query):
    out = _ref_self_attention(p["attn"], value, key, query)
    x = _ref_ln(x + out, p["ln1_g"], p["ln1_b"])
    ff = jnp.maximum(x @ p["w1"].T + p["b1"], 0.0) @ p["w2"].T + p["b2"]
    return _ref_ln(x + ff, p["ln2_g"], p["ln2_b"])


def _ref_decoder_block(p, x, enc_out):
    out = _ref_self_attention(p["self_attn"], x, x, x)
    x = _ref_ln(x + out, p["ln_g"], p["ln_b"])
    return _ref_transformer_block(p["tb"], x, enc_out, enc_out, x)


# ------------------------------ parameters -----------------------------------

def init_params(key):
    ks = jax.random.split(key, 8)

    def w(k, o, i):
        return jax.random.normal(k, (o, i), jnp.float32) * 0.05

    def vec(k, d):
        return jax.random.normal(k, (d,), jnp.float32) * 0.05

    def attn_params(k4):
        a, b, c, d, e = jax.random.split(k4, 5)
        return {"wv": w(a, EMBED, EMBED), "wk": w(b, EMBED, EMBED),
                "wq": w(c, EMBED, EMBED), "wo": w(d, EMBED, EMBED),
                "bo": vec(e, EMBED)}

    return {
        "self_attn": attn_params(ks[0]),
        "ln_g": jnp.ones((EMBED,), jnp.float32),
        "ln_b": jnp.zeros((EMBED,), jnp.float32),
        "tb": {
            "attn": attn_params(ks[1]),
            "ln1_g": jnp.ones((EMBED,), jnp.float32),
            "ln1_b": jnp.zeros((EMBED,), jnp.float32),
            "ln2_g": jnp.ones((EMBED,), jnp.float32),
            "ln2_b": jnp.zeros((EMBED,), jnp.float32),
            "w1": w(ks[2], FF_DIM, EMBED),
            "b1": vec(ks[3], FF_DIM),
            "w2": w(ks[4], EMBED, FF_DIM),
            "b2": vec(ks[5], EMBED),
        },
    }


# ---------------------------------- main --------------------------------------

if __name__ == "__main__":
    key = jax.random.PRNGKey(0)
    k_params, k_x, k_enc = jax.random.split(key, 3)

    params = init_params(k_params)
    kparams = prepare_kernel_params(params)   # one-time weight prep

    N, L = 2, 8
    x = jax.random.normal(k_x, (N, L, EMBED), jnp.float32)
    enc_out = jax.random.normal(k_enc, (N, L, EMBED), jnp.float32)

    out = jax.block_until_ready(decoder_block(kparams, x, enc_out))
    ref = jax.block_until_ready(_ref_decoder_block(params, x, enc_out))

    np.testing.assert_allclose(np.asarray(out), np.asarray(ref),
                               rtol=1e-4, atol=1e-4)
    print("KERNEL_OK")
</pallas_src>

<mosaic_0001>
module attributes {stable_mosaic.version = 11 : i64} {
  func.func @_decoder_block_kernel(%arg0: i32, %arg1: memref<1x8x32xf32, #tpu.memory_space<vmem>>, %arg2: memref<1x8x32xf32, #tpu.memory_space<vmem>>, %arg3: memref<4x8x32xf32, #tpu.memory_space<vmem>>, %arg4: memref<32x32xf32, #tpu.memory_space<vmem>>, %arg5: memref<32x32xf32, #tpu.memory_space<vmem>>, %arg6: memref<32x32xf32, #tpu.memory_space<vmem>>, %arg7: memref<32x512xf32, #tpu.memory_space<vmem>>, %arg8: memref<1x32xf32, #tpu.memory_space<vmem>>, %arg9: memref<1x32xf32, #tpu.memory_space<vmem>>, %arg10: memref<1x32xf32, #tpu.memory_space<vmem>>, %arg11: memref<32x32xf32, #tpu.memory_space<vmem>>, %arg12: memref<32x32xf32, #tpu.memory_space<vmem>>, %arg13: memref<32x512xf32, #tpu.memory_space<vmem>>, %arg14: memref<1x32xf32, #tpu.memory_space<vmem>>, %arg15: memref<1x32xf32, #tpu.memory_space<vmem>>, %arg16: memref<1x32xf32, #tpu.memory_space<vmem>>, %arg17: memref<1x32xf32, #tpu.memory_space<vmem>>, %arg18: memref<1x32xf32, #tpu.memory_space<vmem>>, %arg19: memref<32x64xf32, #tpu.memory_space<vmem>>, %arg20: memref<1x64xf32, #tpu.memory_space<vmem>>, %arg21: memref<64x32xf32, #tpu.memory_space<vmem>>, %arg22: memref<1x32xf32, #tpu.memory_space<vmem>>, %arg23: memref<1x8x32xf32, #tpu.memory_space<vmem>>) attributes {dimension_semantics = [#tpu.dimension_semantics<parallel>], iteration_bounds = array<i64: 2>, scalar_prefetch = 0 : i64, scratch_operands = 0 : i64, tpu.core_type = #tpu.core_type<tc>, window_params = [{transform_indices = @transform_0, window_bounds = array<i64: 1, 8, 32>}, {transform_indices = @transform_1, window_bounds = array<i64: 1, 8, 32>}, {pipeline_mode = #tpu.pipeline_mode<synchronous>, transform_indices = @transform_2, window_bounds = array<i64: 4, 8, 32>}, {pipeline_mode = #tpu.pipeline_mode<synchronous>, transform_indices = @transform_3, window_bounds = array<i64: 32, 32>}, {pipeline_mode = #tpu.pipeline_mode<synchronous>, transform_indices = @transform_4, window_bounds = array<i64: 32, 32>}, {pipeline_mode = #tpu.pipeline_mode<synchronous>, transform_indices = @transform_5, window_bounds = array<i64: 32, 32>}, {pipeline_mode = #tpu.pipeline_mode<synchronous>, transform_indices = @transform_6, window_bounds = array<i64: 32, 512>}, {pipeline_mode = #tpu.pipeline_mode<synchronous>, transform_indices = @transform_7, window_bounds = array<i64: 1, 32>}, {pipeline_mode = #tpu.pipeline_mode<synchronous>, transform_indices = @transform_8, window_bounds = array<i64: 1, 32>}, {pipeline_mode = #tpu.pipeline_mode<synchronous>, transform_indices = @transform_9, window_bounds = array<i64: 1, 32>}, {pipeline_mode = #tpu.pipeline_mode<synchronous>, transform_indices = @transform_10, window_bounds = array<i64: 32, 32>}, {pipeline_mode = #tpu.pipeline_mode<synchronous>, transform_indices = @transform_11, window_bounds = array<i64: 32, 32>}, {pipeline_mode = #tpu.pipeline_mode<synchronous>, transform_indices = @transform_12, window_bounds = array<i64: 32, 512>}, {pipeline_mode = #tpu.pipeline_mode<synchronous>, transform_indices = @transform_13, window_bounds = array<i64: 1, 32>}, {pipeline_mode = #tpu.pipeline_mode<synchronous>, transform_indices = @transform_14, window_bounds = array<i64: 1, 32>}, {pipeline_mode = #tpu.pipeline_mode<synchronous>, transform_indices = @transform_15, window_bounds = array<i64: 1, 32>}, {pipeline_mode = #tpu.pipeline_mode<synchronous>, transform_indices = @transform_16, window_bounds = array<i64: 1, 32>}, {pipeline_mode = #tpu.pipeline_mode<synchronous>, transform_indices = @transform_17, window_bounds = array<i64: 1, 32>}, {pipeline_mode = #tpu.pipeline_mode<synchronous>, transform_indices = @transform_18, window_bounds = array<i64: 32, 64>}, {pipeline_mode = #tpu.pipeline_mode<synchronous>, transform_indices = @transform_19, window_bounds = array<i64: 1, 64>}, {pipeline_mode = #tpu.pipeline_mode<synchronous>, transform_indices = @transform_20, window_bounds = array<i64: 64, 32>}, {pipeline_mode = #tpu.pipeline_mode<synchronous>, transform_indices = @transform_21, window_bounds = array<i64: 1, 32>}, {transform_indices = @transform_22, window_bounds = array<i64: 1, 8, 32>}]} {
    %c0 = arith.constant 0 : index
    %c0_0 = arith.constant 0 : index
    %c0_1 = arith.constant 0 : index
    %0 = vector.load %arg1[%c0, %c0_0, %c0_1] : memref<1x8x32xf32, #tpu.memory_space<vmem>>, vector<1x8x32xf32>
    %1 = vector.shape_cast %0 : vector<1x8x32xf32> to vector<8x32xf32>
    %c0_2 = arith.constant 0 : index
    %c0_3 = arith.constant 0 : index
    %c0_4 = arith.constant 0 : index
    %2 = vector.load %arg2[%c0_2, %c0_3, %c0_4] : memref<1x8x32xf32, #tpu.memory_space<vmem>>, vector<1x8x32xf32>
    %3 = vector.shape_cast %2 : vector<1x8x32xf32> to vector<8x32xf32>
    %c0_5 = arith.constant 0 : index
    %c0_6 = arith.constant 0 : index
    %c0_7 = arith.constant 0 : index
    %4 = vector.load %arg3[%c0_5, %c0_6, %c0_7] : memref<4x8x32xf32, #tpu.memory_space<vmem>>, vector<4x8x32xf32>
    %c0_8 = arith.constant 0 : index
    %c0_9 = arith.constant 0 : index
    %5 = vector.load %arg4[%c0_8, %c0_9] : memref<32x32xf32, #tpu.memory_space<vmem>>, vector<32x32xf32>
    %c0_10 = arith.constant 0 : index
    %c0_11 = arith.constant 0 : index
    %6 = vector.load %arg5[%c0_10, %c0_11] : memref<32x32xf32, #tpu.memory_space<vmem>>, vector<32x32xf32>
    %c0_12 = arith.constant 0 : index
    %c0_13 = arith.constant 0 : index
    %7 = vector.load %arg6[%c0_12, %c0_13] : memref<32x32xf32, #tpu.memory_space<vmem>>, vector<32x32xf32>
    %c0_14 = arith.constant 0 : index
    %c0_15 = arith.constant 0 : index
    %8 = vector.load %arg7[%c0_14, %c0_15] : memref<32x512xf32, #tpu.memory_space<vmem>>, vector<32x512xf32>
    %c0_16 = arith.constant 0 : index
    %c0_17 = arith.constant 0 : index
    %9 = vector.load %arg8[%c0_16, %c0_17] : memref<1x32xf32, #tpu.memory_space<vmem>>, vector<1x32xf32>
    %cst = arith.constant dense<0.000000e+00> : vector<8x32xf32>
    %10 = tpu.matmul %1, %6, %cst {dimension_numbers = #tpu.dot_dimension_numbers<[1], [0], [0], [1], [0, 0, 1, 1], [], []>} : vector<8x32xf32>, vector<32x32xf32>, vector<8x32xf32> -> vector<8x32xf32>
    %cst_18 = arith.constant dense<0.000000e+00> : vector<8x32xf32>
    %11 = tpu.matmul %1, %7, %cst_18 {dimension_numbers = #tpu.dot_dimension_numbers<[1], [0], [0], [1], [0, 0, 1, 1], [], []>} : vector<8x32xf32>, vector<32x32xf32>, vector<8x32xf32> -> vector<8x32xf32>
    %cst_19 = arith.constant dense<0.000000e+00> : vector<8x512xf32>
    %12 = tpu.matmul %1, %8, %cst_19 {dimension_numbers = #tpu.dot_dimension_numbers<[1], [0], [0], [1], [0, 0, 1, 1], [], []>} : vector<8x32xf32>, vector<32x512xf32>, vector<8x512xf32> -> vector<8x512xf32>
    %13 = vector.extract_strided_slice %11 {offsets = [0, 0], sizes = [8, 8], strides = [1, 1]} : vector<8x32xf32> to vector<8x8xf32>
    %14 = vector.extract_strided_slice %10 {offsets = [0, 0], sizes = [8, 8], strides = [1, 1]} : vector<8x32xf32> to vector<8x8xf32>
    %cst_20 = arith.constant dense<0.000000e+00> : vector<8x8xf32>
    %15 = tpu.matmul %13, %14, %cst_20 {dimension_numbers = #tpu.dot_dimension_numbers<[1], [1], [0], [0], [0, 0, 1, 0], [], []>} : vector<8x8xf32>, vector<8x8xf32>, vector<8x8xf32> -> vector<8x8xf32>
    %16 = vector.extract_strided_slice %11 {offsets = [0, 8], sizes = [8, 8], strides = [1, 1]} : vector<8x32xf32> to vector<8x8xf32>
    %17 = vector.extract_strided_slice %10 {offsets = [0, 8], sizes = [8, 8], strides = [1, 1]} : vector<8x32xf32> to vector<8x8xf32>
    %cst_21 = arith.constant dense<0.000000e+00> : vector<8x8xf32>
    %18 = tpu.matmul %16, %17, %cst_21 {dimension_numbers = #tpu.dot_dimension_numbers<[1], [1], [0], [0], [0, 0, 1, 0], [], []>} : vector<8x8xf32>, vector<8x8xf32>, vector<8x8xf32> -> vector<8x8xf32>
    %19 = vector.extract_strided_slice %11 {offsets = [0, 16], sizes = [8, 8], strides = [1, 1]} : vector<8x32xf32> to vector<8x8xf32>
    %20 = vector.extract_strided_slice %10 {offsets = [0, 16], sizes = [8, 8], strides = [1, 1]} : vector<8x32xf32> to vector<8x8xf32>
    %cst_22 = arith.constant dense<0.000000e+00> : vector<8x8xf32>
    %21 = tpu.matmul %19, %20, %cst_22 {dimension_numbers = #tpu.dot_dimension_numbers<[1], [1], [0], [0], [0, 0, 1, 0], [], []>} : vector<8x8xf32>, vector<8x8xf32>, vector<8x8xf32> -> vector<8x8xf32>
    %22 = vector.extract_strided_slice %11 {offsets = [0, 24], sizes = [8, 8], strides = [1, 1]} : vector<8x32xf32> to vector<8x8xf32>
    %23 = vector.extract_strided_slice %10 {offsets = [0, 24], sizes = [8, 8], strides = [1, 1]} : vector<8x32xf32> to vector<8x8xf32>
    %cst_23 = arith.constant dense<0.000000e+00> : vector<8x8xf32>
    %24 = tpu.matmul %22, %23, %cst_23 {dimension_numbers = #tpu.dot_dimension_numbers<[1], [1], [0], [0], [0, 0, 1, 0], [], []>} : vector<8x8xf32>, vector<8x8xf32>, vector<8x8xf32> -> vector<8x8xf32>
    %25 = tpu.concatenate %15, %18, %21, %24 in 1 : vector<8x8xf32>, vector<8x8xf32>, vector<8x8xf32>, vector<8x8xf32> -> vector<8x32xf32>
    %cst_24 = arith.constant dense<0xFF800000> : vector<8xf32>
    %26 = vector.multi_reduction <maximumf>, %25, %cst_24 [1] : vector<8x32xf32> to vector<8xf32>
    %27 = vector.shape_cast %26 : vector<8xf32> to vector<8x1xf32>
    %28 = vector.broadcast %27 : vector<8x1xf32> to vector<8x32xf32>
    %29 = arith.subf %25, %28 : vector<8x32xf32>
    %30 = math.exp %29 : vector<8x32xf32>
    %cst_25 = arith.constant dense<0.000000e+00> : vector<8x32xf32>
    %31 = tpu.matmul %30, %5, %cst_25 {dimension_numbers = #tpu.dot_dimension_numbers<[1], [0], [0], [1], [0, 0, 1, 1], [], []>} : vector<8x32xf32>, vector<32x32xf32>, vector<8x32xf32> -> vector<8x32xf32>
    %32 = arith.divf %30, %31 : vector<8x32xf32>
    %33 = vector.extract_strided_slice %32 {offsets = [0, 0], sizes = [8, 8], strides = [1, 1]} : vector<8x32xf32> to vector<8x8xf32>
    %34 = vector.extract_strided_slice %12 {offsets = [0, 0], sizes = [8, 128], strides = [1, 1]} : vector<8x512xf32> to vector<8x128xf32>
    %cst_26 = arith.constant dense<0.000000e+00> : vector<8x128xf32>
    %35 = tpu.matmul %33, %34, %cst_26 {dimension_numbers = #tpu.dot_dimension_numbers<[1], [0], [0], [1], [0, 0, 1, 1], [], []>} : vector<8x8xf32>, vector<8x128xf32>, vector<8x128xf32> -> vector<8x128xf32>
    %36 = vector.extract_strided_slice %32 {offsets = [0, 8], sizes = [8, 8], strides = [1, 1]} : vector<8x32xf32> to vector<8x8xf32>
    %37 = vector.extract_strided_slice %12 {offsets = [0, 128], sizes = [8, 128], strides = [1, 1]} : vector<8x512xf32> to vector<8x128xf32>
    %cst_27 = arith.constant dense<0.000000e+00> : vector<8x128xf32>
    %38 = tpu.matmul %36, %37, %cst_27 {dimension_numbers = #tpu.dot_dimension_numbers<[1], [0], [0], [1], [0, 0, 1, 1], [], []>} : vector<8x8xf32>, vector<8x128xf32>, vector<8x128xf32> -> vector<8x128xf32>
    %39 = vector.extract_strided_slice %32 {offsets = [0, 16], sizes = [8, 8], strides = [1, 1]} : vector<8x32xf32> to vector<8x8xf32>
    %40 = vector.extract_strided_slice %12 {offsets = [0, 256], sizes = [8, 128], strides = [1, 1]} : vector<8x512xf32> to vector<8x128xf32>
    %cst_28 = arith.constant dense<0.000000e+00> : vector<8x128xf32>
    %41 = tpu.matmul %39, %40, %cst_28 {dimension_numbers = #tpu.dot_dimension_numbers<[1], [0], [0], [1], [0, 0, 1, 1], [], []>} : vector<8x8xf32>, vector<8x128xf32>, vector<8x128xf32> -> vector<8x128xf32>
    %42 = vector.extract_strided_slice %32 {offsets = [0, 24], sizes = [8, 8], strides = [1, 1]} : vector<8x32xf32> to vector<8x8xf32>
    %43 = vector.extract_strided_slice %12 {offsets = [0, 384], sizes = [8, 128], strides = [1, 1]} : vector<8x512xf32> to vector<8x128xf32>
    %cst_29 = arith.constant dense<0.000000e+00> : vector<8x128xf32>
    %44 = tpu.matmul %42, %43, %cst_29 {dimension_numbers = #tpu.dot_dimension_numbers<[1], [0], [0], [1], [0, 0, 1, 1], [], []>} : vector<8x8xf32>, vector<8x128xf32>, vector<8x128xf32> -> vector<8x128xf32>
    %45 = tpu.concatenate %35, %38, %41, %44 in 0 : vector<8x128xf32>, vector<8x128xf32>, vector<8x128xf32>, vector<8x128xf32> -> vector<32x128xf32>
    %46 = vector.extract_strided_slice %4 {offsets = [0, 0, 0], sizes = [1, 8, 32], strides = [1, 1, 1]} : vector<4x8x32xf32> to vector<1x8x32xf32>
    %47 = vector.shape_cast %46 : vector<1x8x32xf32> to vector<8x32xf32>
    %48 = vector.extract_strided_slice %45 {offsets = [0, 0], sizes = [32, 32], strides = [1, 1]} : vector<32x128xf32> to vector<32x32xf32>
    %cst_30 = arith.constant dense<0.000000e+00> : vector<8x32xf32>
    %49 = tpu.matmul %47, %48, %cst_30 {dimension_numbers = #tpu.dot_dimension_numbers<[1], [0], [0], [1], [0, 0, 1, 1], [], []>} : vector<8x32xf32>, vector<32x32xf32>, vector<8x32xf32> -> vector<8x32xf32>
    %50 = vector.broadcast %9 : vector<1x32xf32> to vector<8x32xf32>
    %51 = arith.addf %50, %49 : vector<8x32xf32>
    %52 = vector.extract_strided_slice %4 {offsets = [1, 0, 0], sizes = [1, 8, 32], strides = [1, 1, 1]} : vector<4x8x32xf32> to vector<1x8x32xf32>
    %53 = vector.shape_cast %52 : vector<1x8x32xf32> to vector<8x32xf32>
    %54 = vector.extract_strided_slice %45 {offsets = [0, 32], sizes = [32, 32], strides = [1, 1]} : vector<32x128xf32> to vector<32x32xf32>
    %cst_31 = arith.constant dense<0.000000e+00> : vector<8x32xf32>
    %55 = tpu.matmul %53, %54, %cst_31 {dimension_numbers = #tpu.dot_dimension_numbers<[1], [0], [0], [1], [0, 0, 1, 1], [], []>} : vector<8x32xf32>, vector<32x32xf32>, vector<8x32xf32> -> vector<8x32xf32>
    %56 = arith.addf %51, %55 : vector<8x32xf32>
    %57 = vector.extract_strided_slice %4 {offsets = [2, 0, 0], sizes = [1, 8, 32], strides = [1, 1, 1]} : vector<4x8x32xf32> to vector<1x8x32xf32>
    %58 = vector.shape_cast %57 : vector<1x8x32xf32> to vector<8x32xf32>
    %59 = vector.extract_strided_slice %45 {offsets = [0, 64], sizes = [32, 32], strides = [1, 1]} : vector<32x128xf32> to vector<32x32xf32>
    %cst_32 = arith.constant dense<0.000000e+00> : vector<8x32xf32>
    %60 = tpu.matmul %58, %59, %cst_32 {dimension_numbers = #tpu.dot_dimension_numbers<[1], [0], [0], [1], [0, 0, 1, 1], [], []>} : vector<8x32xf32>, vector<32x32xf32>, vector<8x32xf32> -> vector<8x32xf32>
    %61 = arith.addf %56, %60 : vector<8x32xf32>
    %62 = vector.extract_strided_slice %4 {offsets = [3, 0, 0], sizes = [1, 8, 32], strides = [1, 1, 1]} : vector<4x8x32xf32> to vector<1x8x32xf32>
    %63 = vector.shape_cast %62 : vector<1x8x32xf32> to vector<8x32xf32>
    %64 = vector.extract_strided_slice %45 {offsets = [0, 96], sizes = [32, 32], strides = [1, 1]} : vector<32x128xf32> to vector<32x32xf32>
    %cst_33 = arith.constant dense<0.000000e+00> : vector<8x32xf32>
    %65 = tpu.matmul %63, %64, %cst_33 {dimension_numbers = #tpu.dot_dimension_numbers<[1], [0], [0], [1], [0, 0, 1, 1], [], []>} : vector<8x32xf32>, vector<32x32xf32>, vector<8x32xf32> -> vector<8x32xf32>
    %66 = arith.addf %61, %65 : vector<8x32xf32>
    %67 = arith.addf %1, %66 : vector<8x32xf32>
    %c0_34 = arith.constant 0 : index
    %c0_35 = arith.constant 0 : index
    %68 = vector.load %arg9[%c0_34, %c0_35] : memref<1x32xf32, #tpu.memory_space<vmem>>, vector<1x32xf32>
    %c0_36 = arith.constant 0 : index
    %c0_37 = arith.constant 0 : index
    %69 = vector.load %arg10[%c0_36, %c0_37] : memref<1x32xf32, #tpu.memory_space<vmem>>, vector<1x32xf32>
    %cst_38 = arith.constant dense<0.000000e+00> : vector<8xf32>
    %70 = vector.multi_reduction <add>, %67, %cst_38 [1] : vector<8x32xf32> to vector<8xf32>
    %71 = vector.shape_cast %70 : vector<8xf32> to vector<8x1xf32>
    %cst_39 = arith.constant 3.200000e+01 : f32
    %72 = vector.broadcast %cst_39 : f32 to vector<8x1xf32>
    %73 = arith.divf %71, %72 : vector<8x1xf32>
    %74 = vector.broadcast %73 : vector<8x1xf32> to vector<8x32xf32>
    %75 = arith.subf %67, %74 : vector<8x32xf32>
    %76 = arith.mulf %75, %75 : vector<8x32xf32>
    %cst_40 = arith.constant dense<0.000000e+00> : vector<8xf32>
    %77 = vector.multi_reduction <add>, %76, %cst_40 [1] : vector<8x32xf32> to vector<8xf32>
    %78 = vector.shape_cast %77 : vector<8xf32> to vector<8x1xf32>
    %cst_41 = arith.constant 3.200000e+01 : f32
    %79 = vector.broadcast %cst_41 : f32 to vector<8x1xf32>
    %80 = arith.divf %78, %79 : vector<8x1xf32>
    %81 = vector.broadcast %73 : vector<8x1xf32> to vector<8x32xf32>
    %82 = arith.subf %67, %81 : vector<8x32xf32>
    %cst_42 = arith.constant 9.99999974E-6 : f32
    %83 = vector.broadcast %cst_42 : f32 to vector<8x1xf32>
    %84 = arith.addf %80, %83 : vector<8x1xf32>
    %85 = math.rsqrt %84 : vector<8x1xf32>
    %86 = vector.broadcast %85 : vector<8x1xf32> to vector<8x32xf32>
    %87 = arith.mulf %82, %86 : vector<8x32xf32>
    %88 = vector.broadcast %68 : vector<1x32xf32> to vector<8x32xf32>
    %89 = arith.mulf %87, %88 : vector<8x32xf32>
    %90 = vector.broadcast %69 : vector<1x32xf32> to vector<8x32xf32>
    %91 = arith.addf %89, %90 : vector<8x32xf32>
    %c0_43 = arith.constant 0 : index
    %c0_44 = arith.constant 0 : index
    %92 = vector.load %arg11[%c0_43, %c0_44] : memref<32x32xf32, #tpu.memory_space<vmem>>, vector<32x32xf32>
    %c0_45 = arith.constant 0 : index
    %c0_46 = arith.constant 0 : index
    %93 = vector.load %arg12[%c0_45, %c0_46] : memref<32x32xf32, #tpu.memory_space<vmem>>, vector<32x32xf32>
    %c0_47 = arith.constant 0 : index
    %c0_48 = arith.constant 0 : index
    %94 = vector.load %arg13[%c0_47, %c0_48] : memref<32x512xf32, #tpu.memory_space<vmem>>, vector<32x512xf32>
    %c0_49 = arith.constant 0 : index
    %c0_50 = arith.constant 0 : index
    %95 = vector.load %arg14[%c0_49, %c0_50] : memref<1x32xf32, #tpu.memory_space<vmem>>, vector<1x32xf32>
    %cst_51 = arith.constant dense<0.000000e+00> : vector<8x32xf32>
    %96 = tpu.matmul %3, %92, %cst_51 {dimension_numbers = #tpu.dot_dimension_numbers<[1], [0], [0], [1], [0, 0, 1, 1], [], []>} : vector<8x32xf32>, vector<32x32xf32>, vector<8x32xf32> -> vector<8x32xf32>
    %cst_52 = arith.constant dense<0.000000e+00> : vector<8x32xf32>
    %97 = tpu.matmul %91, %93, %cst_52 {dimension_numbers = #tpu.dot_dimension_numbers<[1], [0], [0], [1], [0, 0, 1, 1], [], []>} : vector<8x32xf32>, vector<32x32xf32>, vector<8x32xf32> -> vector<8x32xf32>
    %cst_53 = arith.constant dense<0.000000e+00> : vector<8x512xf32>
    %98 = tpu.matmul %3, %94, %cst_53 {dimension_numbers = #tpu.dot_dimension_numbers<[1], [0], [0], [1], [0, 0, 1, 1], [], []>} : vector<8x32xf32>, vector<32x512xf32>, vector<8x512xf32> -> vector<8x512xf32>
    %99 = vector.extract_strided_slice %97 {offsets = [0, 0], sizes = [8, 8], strides = [1, 1]} : vector<8x32xf32> to vector<8x8xf32>
    %100 = vector.extract_strided_slice %96 {offsets = [0, 0], sizes = [8, 8], strides = [1, 1]} : vector<8x32xf32> to vector<8x8xf32>
    %cst_54 = arith.constant dense<0.000000e+00> : vector<8x8xf32>
    %101 = tpu.matmul %99, %100, %cst_54 {dimension_numbers = #tpu.dot_dimension_numbers<[1], [1], [0], [0], [0, 0, 1, 0], [], []>} : vector<8x8xf32>, vector<8x8xf32>, vector<8x8xf32> -> vector<8x8xf32>
    %102 = vector.extract_strided_slice %97 {offsets = [0, 8], sizes = [8, 8], strides = [1, 1]} : vector<8x32xf32> to vector<8x8xf32>
    %103 = vector.extract_strided_slice %96 {offsets = [0, 8], sizes = [8, 8], strides = [1, 1]} : vector<8x32xf32> to vector<8x8xf32>
    %cst_55 = arith.constant dense<0.000000e+00> : vector<8x8xf32>
    %104 = tpu.matmul %102, %103, %cst_55 {dimension_numbers = #tpu.dot_dimension_numbers<[1], [1], [0], [0], [0, 0, 1, 0], [], []>} : vector<8x8xf32>, vector<8x8xf32>, vector<8x8xf32> -> vector<8x8xf32>
    %105 = vector.extract_strided_slice %97 {offsets = [0, 16], sizes = [8, 8], strides = [1, 1]} : vector<8x32xf32> to vector<8x8xf32>
    %106 = vector.extract_strided_slice %96 {offsets = [0, 16], sizes = [8, 8], strides = [1, 1]} : vector<8x32xf32> to vector<8x8xf32>
    %cst_56 = arith.constant dense<0.000000e+00> : vector<8x8xf32>
    %107 = tpu.matmul %105, %106, %cst_56 {dimension_numbers = #tpu.dot_dimension_numbers<[1], [1], [0], [0], [0, 0, 1, 0], [], []>} : vector<8x8xf32>, vector<8x8xf32>, vector<8x8xf32> -> vector<8x8xf32>
    %108 = vector.extract_strided_slice %97 {offsets = [0, 24], sizes = [8, 8], strides = [1, 1]} : vector<8x32xf32> to vector<8x8xf32>
    %109 = vector.extract_strided_slice %96 {offsets = [0, 24], sizes = [8, 8], strides = [1, 1]} : vector<8x32xf32> to vector<8x8xf32>
    %cst_57 = arith.constant dense<0.000000e+00> : vector<8x8xf32>
    %110 = tpu.matmul %108, %109, %cst_57 {dimension_numbers = #tpu.dot_dimension_numbers<[1], [1], [0], [0], [0, 0, 1, 0], [], []>} : vector<8x8xf32>, vector<8x8xf32>, vector<8x8xf32> -> vector<8x8xf32>
    %111 = tpu.concatenate %101, %104, %107, %110 in 1 : vector<8x8xf32>, vector<8x8xf32>, vector<8x8xf32>, vector<8x8xf32> -> vector<8x32xf32>
    %cst_58 = arith.constant dense<0xFF800000> : vector<8xf32>
    %112 = vector.multi_reduction <maximumf>, %111, %cst_58 [1] : vector<8x32xf32> to vector<8xf32>
    %113 = vector.shape_cast %112 : vector<8xf32> to vector<8x1xf32>
    %114 = vector.broadcast %113 : vector<8x1xf32> to vector<8x32xf32>
    %115 = arith.subf %111, %114 : vector<8x32xf32>
    %116 = math.exp %115 : vector<8x32xf32>
    %cst_59 = arith.constant dense<0.000000e+00> : vector<8x32xf32>
    %117 = tpu.matmul %116, %5, %cst_59 {dimension_numbers = #tpu.dot_dimension_numbers<[1], [0], [0], [1], [0, 0, 1, 1], [], []>} : vector<8x32xf32>, vector<32x32xf32>, vector<8x32xf32> -> vector<8x32xf32>
    %118 = arith.divf %116, %117 : vector<8x32xf32>
    %119 = vector.extract_strided_slice %118 {offsets = [0, 0], sizes = [8, 8], strides = [1, 1]} : vector<8x32xf32> to vector<8x8xf32>
    %120 = vector.extract_strided_slice %98 {offsets = [0, 0], sizes = [8, 128], strides = [1, 1]} : vector<8x512xf32> to vector<8x128xf32>
    %cst_60 = arith.constant dense<0.000000e+00> : vector<8x128xf32>
    %121 = tpu.matmul %119, %120, %cst_60 {dimension_numbers = #tpu.dot_dimension_numbers<[1], [0], [0], [1], [0, 0, 1, 1], [], []>} : vector<8x8xf32>, vector<8x128xf32>, vector<8x128xf32> -> vector<8x128xf32>
    %122 = vector.extract_strided_slice %118 {offsets = [0, 8], sizes = [8, 8], strides = [1, 1]} : vector<8x32xf32> to vector<8x8xf32>
    %123 = vector.extract_strided_slice %98 {offsets = [0, 128], sizes = [8, 128], strides = [1, 1]} : vector<8x512xf32> to vector<8x128xf32>
    %cst_61 = arith.constant dense<0.000000e+00> : vector<8x128xf32>
    %124 = tpu.matmul %122, %123, %cst_61 {dimension_numbers = #tpu.dot_dimension_numbers<[1], [0], [0], [1], [0, 0, 1, 1], [], []>} : vector<8x8xf32>, vector<8x128xf32>, vector<8x128xf32> -> vector<8x128xf32>
    %125 = vector.extract_strided_slice %118 {offsets = [0, 16], sizes = [8, 8], strides = [1, 1]} : vector<8x32xf32> to vector<8x8xf32>
    %126 = vector.extract_strided_slice %98 {offsets = [0, 256], sizes = [8, 128], strides = [1, 1]} : vector<8x512xf32> to vector<8x128xf32>
    %cst_62 = arith.constant dense<0.000000e+00> : vector<8x128xf32>
    %127 = tpu.matmul %125, %126, %cst_62 {dimension_numbers = #tpu.dot_dimension_numbers<[1], [0], [0], [1], [0, 0, 1, 1], [], []>} : vector<8x8xf32>, vector<8x128xf32>, vector<8x128xf32> -> vector<8x128xf32>
    %128 = vector.extract_strided_slice %118 {offsets = [0, 24], sizes = [8, 8], strides = [1, 1]} : vector<8x32xf32> to vector<8x8xf32>
    %129 = vector.extract_strided_slice %98 {offsets = [0, 384], sizes = [8, 128], strides = [1, 1]} : vector<8x512xf32> to vector<8x128xf32>
    %cst_63 = arith.constant dense<0.000000e+00> : vector<8x128xf32>
    %130 = tpu.matmul %128, %129, %cst_63 {dimension_numbers = #tpu.dot_dimension_numbers<[1], [0], [0], [1], [0, 0, 1, 1], [], []>} : vector<8x8xf32>, vector<8x128xf32>, vector<8x128xf32> -> vector<8x128xf32>
    %131 = tpu.concatenate %121, %124, %127, %130 in 0 : vector<8x128xf32>, vector<8x128xf32>, vector<8x128xf32>, vector<8x128xf32> -> vector<32x128xf32>
    %132 = vector.extract_strided_slice %4 {offsets = [0, 0, 0], sizes = [1, 8, 32], strides = [1, 1, 1]} : vector<4x8x32xf32> to vector<1x8x32xf32>
    %133 = vector.shape_cast %132 : vector<1x8x32xf32> to vector<8x32xf32>
    %134 = vector.extract_strided_slice %131 {offsets = [0, 0], sizes = [32, 32], strides = [1, 1]} : vector<32x128xf32> to vector<32x32xf32>
    %cst_64 = arith.constant dense<0.000000e+00> : vector<8x32xf32>
    %135 = tpu.matmul %133, %134, %cst_64 {dimension_numbers = #tpu.dot_dimension_numbers<[1], [0], [0], [1], [0, 0, 1, 1], [], []>} : vector<8x32xf32>, vector<32x32xf32>, vector<8x32xf32> -> vector<8x32xf32>
    %136 = vector.broadcast %95 : vector<1x32xf32> to vector<8x32xf32>
    %137 = arith.addf %136, %135 : vector<8x32xf32>
    %138 = vector.extract_strided_slice %4 {offsets = [1, 0, 0], sizes = [1, 8, 32], strides = [1, 1, 1]} : vector<4x8x32xf32> to vector<1x8x32xf32>
    %139 = vector.shape_cast %138 : vector<1x8x32xf32> to vector<8x32xf32>
    %140 = vector.extract_strided_slice %131 {offsets = [0, 32], sizes = [32, 32], strides = [1, 1]} : vector<32x128xf32> to vector<32x32xf32>
    %cst_65 = arith.constant dense<0.000000e+00> : vector<8x32xf32>
    %141 = tpu.matmul %139, %140, %cst_65 {dimension_numbers = #tpu.dot_dimension_numbers<[1], [0], [0], [1], [0, 0, 1, 1], [], []>} : vector<8x32xf32>, vector<32x32xf32>, vector<8x32xf32> -> vector<8x32xf32>
    %142 = arith.addf %137, %141 : vector<8x32xf32>
    %143 = vector.extract_strided_slice %4 {offsets = [2, 0, 0], sizes = [1, 8, 32], strides = [1, 1, 1]} : vector<4x8x32xf32> to vector<1x8x32xf32>
    %144 = vector.shape_cast %143 : vector<1x8x32xf32> to vector<8x32xf32>
    %145 = vector.extract_strided_slice %131 {offsets = [0, 64], sizes = [32, 32], strides = [1, 1]} : vector<32x128xf32> to vector<32x32xf32>
    %cst_66 = arith.constant dense<0.000000e+00> : vector<8x32xf32>
    %146 = tpu.matmul %144, %145, %cst_66 {dimension_numbers = #tpu.dot_dimension_numbers<[1], [0], [0], [1], [0, 0, 1, 1], [], []>} : vector<8x32xf32>, vector<32x32xf32>, vector<8x32xf32> -> vector<8x32xf32>
    %147 = arith.addf %142, %146 : vector<8x32xf32>
    %148 = vector.extract_strided_slice %4 {offsets = [3, 0, 0], sizes = [1, 8, 32], strides = [1, 1, 1]} : vector<4x8x32xf32> to vector<1x8x32xf32>
    %149 = vector.shape_cast %148 : vector<1x8x32xf32> to vector<8x32xf32>
    %150 = vector.extract_strided_slice %131 {offsets = [0, 96], sizes = [32, 32], strides = [1, 1]} : vector<32x128xf32> to vector<32x32xf32>
    %cst_67 = arith.constant dense<0.000000e+00> : vector<8x32xf32>
    %151 = tpu.matmul %149, %150, %cst_67 {dimension_numbers = #tpu.dot_dimension_numbers<[1], [0], [0], [1], [0, 0, 1, 1], [], []>} : vector<8x32xf32>, vector<32x32xf32>, vector<8x32xf32> -> vector<8x32xf32>
    %152 = arith.addf %147, %151 : vector<8x32xf32>
    %153 = arith.addf %91, %152 : vector<8x32xf32>
    %c0_68 = arith.constant 0 : index
    %c0_69 = arith.constant 0 : index
    %154 = vector.load %arg15[%c0_68, %c0_69] : memref<1x32xf32, #tpu.memory_space<vmem>>, vector<1x32xf32>
    %c0_70 = arith.constant 0 : index
    %c0_71 = arith.constant 0 : index
    %155 = vector.load %arg16[%c0_70, %c0_71] : memref<1x32xf32, #tpu.memory_space<vmem>>, vector<1x32xf32>
    %cst_72 = arith.constant dense<0.000000e+00> : vector<8xf32>
    %156 = vector.multi_reduction <add>, %153, %cst_72 [1] : vector<8x32xf32> to vector<8xf32>
    %157 = vector.shape_cast %156 : vector<8xf32> to vector<8x1xf32>
    %cst_73 = arith.constant 3.200000e+01 : f32
    %158 = vector.broadcast %cst_73 : f32 to vector<8x1xf32>
    %159 = arith.divf %157, %158 : vector<8x1xf32>
    %160 = vector.broadcast %159 : vector<8x1xf32> to vector<8x32xf32>
    %161 = arith.subf %153, %160 : vector<8x32xf32>
    %162 = arith.mulf %161, %161 : vector<8x32xf32>
    %cst_74 = arith.constant dense<0.000000e+00> : vector<8xf32>
    %163 = vector.multi_reduction <add>, %162, %cst_74 [1] : vector<8x32xf32> to vector<8xf32>
    %164 = vector.shape_cast %163 : vector<8xf32> to vector<8x1xf32>
    %cst_75 = arith.constant 3.200000e+01 : f32
    %165 = vector.broadcast %cst_75 : f32 to vector<8x1xf32>
    %166 = arith.divf %164, %165 : vector<8x1xf32>
    %167 = vector.broadcast %159 : vector<8x1xf32> to vector<8x32xf32>
    %168 = arith.subf %153, %167 : vector<8x32xf32>
    %cst_76 = arith.constant 9.99999974E-6 : f32
    %169 = vector.broadcast %cst_76 : f32 to vector<8x1xf32>
    %170 = arith.addf %166, %169 : vector<8x1xf32>
    %171 = math.rsqrt %170 : vector<8x1xf32>
    %172 = vector.broadcast %171 : vector<8x1xf32> to vector<8x32xf32>
    %173 = arith.mulf %168, %172 : vector<8x32xf32>
    %174 = vector.broadcast %154 : vector<1x32xf32> to vector<8x32xf32>
    %175 = arith.mulf %173, %174 : vector<8x32xf32>
    %176 = vector.broadcast %155 : vector<1x32xf32> to vector<8x32xf32>
    %177 = arith.addf %175, %176 : vector<8x32xf32>
    %c0_77 = arith.constant 0 : index
    %c0_78 = arith.constant 0 : index
    %178 = vector.load %arg19[%c0_77, %c0_78] : memref<32x64xf32, #tpu.memory_space<vmem>>, vector<32x64xf32>
    %cst_79 = arith.constant dense<0.000000e+00> : vector<8x64xf32>
    %179 = tpu.matmul %177, %178, %cst_79 {dimension_numbers = #tpu.dot_dimension_numbers<[1], [0], [0], [1], [0, 0, 1, 1], [], []>} : vector<8x32xf32>, vector<32x64xf32>, vector<8x64xf32> -> vector<8x64xf32>
    %c0_80 = arith.constant 0 : index
    %c0_81 = arith.constant 0 : index
    %180 = vector.load %arg20[%c0_80, %c0_81] : memref<1x64xf32, #tpu.memory_space<vmem>>, vector<1x64xf32>
    %181 = vector.broadcast %180 : vector<1x64xf32> to vector<8x64xf32>
    %182 = arith.addf %179, %181 : vector<8x64xf32>
    %cst_82 = arith.constant 0.000000e+00 : f32
    %183 = vector.broadcast %cst_82 : f32 to vector<8x64xf32>
    %184 = arith.maximumf %182, %183 : vector<8x64xf32>
    %c0_83 = arith.constant 0 : index
    %c0_84 = arith.constant 0 : index
    %185 = vector.load %arg21[%c0_83, %c0_84] : memref<64x32xf32, #tpu.memory_space<vmem>>, vector<64x32xf32>
    %cst_85 = arith.constant dense<0.000000e+00> : vector<8x32xf32>
    %186 = tpu.matmul %184, %185, %cst_85 {dimension_numbers = #tpu.dot_dimension_numbers<[1], [0], [0], [1], [0, 0, 1, 1], [], []>} : vector<8x64xf32>, vector<64x32xf32>, vector<8x32xf32> -> vector<8x32xf32>
    %c0_86 = arith.constant 0 : index
    %c0_87 = arith.constant 0 : index
    %187 = vector.load %arg22[%c0_86, %c0_87] : memref<1x32xf32, #tpu.memory_space<vmem>>, vector<1x32xf32>
    %188 = vector.broadcast %187 : vector<1x32xf32> to vector<8x32xf32>
    %189 = arith.addf %186, %188 : vector<8x32xf32>
    %190 = arith.addf %177, %189 : vector<8x32xf32>
    %c0_88 = arith.constant 0 : index
    %c0_89 = arith.constant 0 : index
    %191 = vector.load %arg17[%c0_88, %c0_89] : memref<1x32xf32, #tpu.memory_space<vmem>>, vector<1x32xf32>
    %c0_90 = arith.constant 0 : index
    %c0_91 = arith.constant 0 : index
    %192 = vector.load %arg18[%c0_90, %c0_91] : memref<1x32xf32, #tpu.memory_space<vmem>>, vector<1x32xf32>
    %cst_92 = arith.constant dense<0.000000e+00> : vector<8xf32>
    %193 = vector.multi_reduction <add>, %190, %cst_92 [1] : vector<8x32xf32> to vector<8xf32>
    %194 = vector.shape_cast %193 : vector<8xf32> to vector<8x1xf32>
    %cst_93 = arith.constant 3.200000e+01 : f32
    %195 = vector.broadcast %cst_93 : f32 to vector<8x1xf32>
    %196 = arith.divf %194, %195 : vector<8x1xf32>
    %197 = vector.broadcast %196 : vector<8x1xf32> to vector<8x32xf32>
    %198 = arith.subf %190, %197 : vector<8x32xf32>
    %199 = arith.mulf %198, %198 : vector<8x32xf32>
    %cst_94 = arith.constant dense<0.000000e+00> : vector<8xf32>
    %200 = vector.multi_reduction <add>, %199, %cst_94 [1] : vector<8x32xf32> to vector<8xf32>
    %201 = vector.shape_cast %200 : vector<8xf32> to vector<8x1xf32>
    %cst_95 = arith.constant 3.200000e+01 : f32
    %202 = vector.broadcast %cst_95 : f32 to vector<8x1xf32>
    %203 = arith.divf %201, %202 : vector<8x1xf32>
    %204 = vector.broadcast %196 : vector<8x1xf32> to vector<8x32xf32>
    %205 = arith.subf %190, %204 : vector<8x32xf32>
    %cst_96 = arith.constant 9.99999974E-6 : f32
    %206 = vector.broadcast %cst_96 : f32 to vector<8x1xf32>
    %207 = arith.addf %203, %206 : vector<8x1xf32>
    %208 = math.rsqrt %207 : vector<8x1xf32>
    %209 = vector.broadcast %208 : vector<8x1xf32> to vector<8x32xf32>
    %210 = arith.mulf %205, %209 : vector<8x32xf32>
    %211 = vector.broadcast %191 : vector<1x32xf32> to vector<8x32xf32>
    %212 = arith.mulf %210, %211 : vector<8x32xf32>
    %213 = vector.broadcast %192 : vector<1x32xf32> to vector<8x32xf32>
    %214 = arith.addf %212, %213 : vector<8x32xf32>
    %c0_97 = arith.constant 0 : index
    %c0_98 = arith.constant 0 : index
    %c0_99 = arith.constant 0 : index
    %215 = vector.load %arg23[%c0_97, %c0_98, %c0_99] : memref<1x8x32xf32, #tpu.memory_space<vmem>>, vector<1x8x32xf32>
    %216 = vector.shape_cast %215 : vector<1x8x32xf32> to vector<8x32xf32>
    %217 = vector.shape_cast %214 : vector<8x32xf32> to vector<1x8x32xf32>
    tpu.vector_store %arg23[%c0_97, %c0_98, %c0_99], %217 {strides = array<i32>} : memref<1x8x32xf32, #tpu.memory_space<vmem>>, vector<1x8x32xf32>,
    return
  }
  func.func @transform_0(%arg0: i32) -> (i32, i32, i32) {
    %c0_i32 = arith.constant 0 : i32
    %c0_i32_0 = arith.constant 0 : i32
    %c0_i32_1 = arith.constant 0 : i32
    return %arg0, %c0_i32, %c0_i32_0 : i32, i32, i32
  }
  func.func @transform_1(%arg0: i32) -> (i32, i32, i32) {
    %c0_i32 = arith.constant 0 : i32
    %c0_i32_0 = arith.constant 0 : i32
    %c0_i32_1 = arith.constant 0 : i32
    return %arg0, %c0_i32, %c0_i32_0 : i32, i32, i32
  }
  func.func @transform_2(%arg0: i32) -> (i32, i32, i32) {
    %c0_i32 = arith.constant 0 : i32
    %c0_i32_0 = arith.constant 0 : i32
    %c0_i32_1 = arith.constant 0 : i32
    %c0_i32_2 = arith.constant 0 : i32
    return %c0_i32, %c0_i32_0, %c0_i32_1 : i32, i32, i32
  }
  func.func @transform_3(%arg0: i32) -> (i32, i32) {
    %c0_i32 = arith.constant 0 : i32
    %c0_i32_0 = arith.constant 0 : i32
    %c0_i32_1 = arith.constant 0 : i32
    return %c0_i32, %c0_i32_0 : i32, i32
  }
  func.func @transform_4(%arg0: i32) -> (i32, i32) {
    %c0_i32 = arith.constant 0 : i32
    %c0_i32_0 = arith.constant 0 : i32
    %c0_i32_1 = arith.constant 0 : i32
    return %c0_i32, %c0_i32_0 : i32, i32
  }
  func.func @transform_5(%arg0: i32) -> (i32, i32) {
    %c0_i32 = arith.constant 0 : i32
    %c0_i32_0 = arith.constant 0 : i32
    %c0_i32_1 = arith.constant 0 : i32
    return %c0_i32, %c0_i32_0 : i32, i32
  }
  func.func @transform_6(%arg0: i32) -> (i32, i32) {
    %c0_i32 = arith.constant 0 : i32
    %c0_i32_0 = arith.constant 0 : i32
    %c0_i32_1 = arith.constant 0 : i32
    return %c0_i32, %c0_i32_0 : i32, i32
  }
  func.func @transform_7(%arg0: i32) -> (i32, i32) {
    %c0_i32 = arith.constant 0 : i32
    %c0_i32_0 = arith.constant 0 : i32
    %c0_i32_1 = arith.constant 0 : i32
    return %c0_i32, %c0_i32_0 : i32, i32
  }
  func.func @transform_8(%arg0: i32) -> (i32, i32) {
    %c0_i32 = arith.constant 0 : i32
    %c0_i32_0 = arith.constant 0 : i32
    %c0_i32_1 = arith.constant 0 : i32
    return %c0_i32, %c0_i32_0 : i32, i32
  }
  func.func @transform_9(%arg0: i32) -> (i32, i32) {
    %c0_i32 = arith.constant 0 : i32
    %c0_i32_0 = arith.constant 0 : i32
    %c0_i32_1 = arith.constant 0 : i32
    return %c0_i32, %c0_i32_0 : i32, i32
  }
  func.func @transform_10(%arg0: i32) -> (i32, i32) {
    %c0_i32 = arith.constant 0 : i32
    %c0_i32_0 = arith.constant 0 : i32
    %c0_i32_1 = arith.constant 0 : i32
    return %c0_i32, %c0_i32_0 : i32, i32
  }
  func.func @transform_11(%arg0: i32) -> (i32, i32) {
    %c0_i32 = arith.constant 0 : i32
    %c0_i32_0 = arith.constant 0 : i32
    %c0_i32_1 = arith.constant 0 : i32
    return %c0_i32, %c0_i32_0 : i32, i32
  }
  func.func @transform_12(%arg0: i32) -> (i32, i32) {
    %c0_i32 = arith.constant 0 : i32
    %c0_i32_0 = arith.constant 0 : i32
    %c0_i32_1 = arith.constant 0 : i32
    return %c0_i32, %c0_i32_0 : i32, i32
  }
  func.func @transform_13(%arg0: i32) -> (i32, i32) {
    %c0_i32 = arith.constant 0 : i32
    %c0_i32_0 = arith.constant 0 : i32
    %c0_i32_1 = arith.constant 0 : i32
    return %c0_i32, %c0_i32_0 : i32, i32
  }
  func.func @transform_14(%arg0: i32) -> (i32, i32) {
    %c0_i32 = arith.constant 0 : i32
    %c0_i32_0 = arith.constant 0 : i32
    %c0_i32_1 = arith.constant 0 : i32
    return %c0_i32, %c0_i32_0 : i32, i32
  }
  func.func @transform_15(%arg0: i32) -> (i32, i32) {
    %c0_i32 = arith.constant 0 : i32
    %c0_i32_0 = arith.constant 0 : i32
    %c0_i32_1 = arith.constant 0 : i32
    return %c0_i32, %c0_i32_0 : i32, i32
  }
  func.func @transform_16(%arg0: i32) -> (i32, i32) {
    %c0_i32 = arith.constant 0 : i32
    %c0_i32_0 = arith.constant 0 : i32
    %c0_i32_1 = arith.constant 0 : i32
    return %c0_i32, %c0_i32_0 : i32, i32
  }
  func.func @transform_17(%arg0: i32) -> (i32, i32) {
    %c0_i32 = arith.constant 0 : i32
    %c0_i32_0 = arith.constant 0 : i32
    %c0_i32_1 = arith.constant 0 : i32
    return %c0_i32, %c0_i32_0 : i32, i32
  }
  func.func @transform_18(%arg0: i32) -> (i32, i32) {
    %c0_i32 = arith.constant 0 : i32
    %c0_i32_0 = arith.constant 0 : i32
    %c0_i32_1 = arith.constant 0 : i32
    return %c0_i32, %c0_i32_0 : i32, i32
  }
  func.func @transform_19(%arg0: i32) -> (i32, i32) {
    %c0_i32 = arith.constant 0 : i32
    %c0_i32_0 = arith.constant 0 : i32
    %c0_i32_1 = arith.constant 0 : i32
    return %c0_i32, %c0_i32_0 : i32, i32
  }
  func.func @transform_20(%arg0: i32) -> (i32, i32) {
    %c0_i32 = arith.constant 0 : i32
    %c0_i32_0 = arith.constant 0 : i32
    %c0_i32_1 = arith.constant 0 : i32
    return %c0_i32, %c0_i32_0 : i32, i32
  }
  func.func @transform_21(%arg0: i32) -> (i32, i32) {
    %c0_i32 = arith.constant 0 : i32
    %c0_i32_0 = arith.constant 0 : i32
    %c0_i32_1 = arith.constant 0 : i32
    return %c0_i32, %c0_i32_0 : i32, i32
  }
  func.func @transform_22(%arg0: i32) -> (i32, i32, i32) {
    %c0_i32 = arith.constant 0 : i32
    %c0_i32_0 = arith.constant 0 : i32
    %c0_i32_1 = arith.constant 0 : i32
    return %arg0, %c0_i32, %c0_i32_0 : i32, i32, i32
  }
}

</mosaic_0001>

<bundles_post_ra>
// kernel: decoder_block.1
= control target key start
LH: loop header
LB: loop body
LE: loop exit
PB: predicated region body
PF: predicated region fallthrough
CT: control target
= control target key end

     0   :  { %s6300_s0 = inlined_call_operand.hbm [shape: f32[2,8,32], index: 0, kind: input, shape index: {}]   ;;  %s6301_s1 = inlined_call_operand.hbm [shape: f32[2,8,32], index: 1, kind: input, shape index: {}]   ;;  %s6302_s2 = inlined_call_operand.hbm [shape: f32[4,8,32], index: 2, kind: input, shape index: {}]   ;;  %s6303_s3 = inlined_call_operand.vmem [shape: f32[32,32], index: 3, kind: input, shape index: {}]   ;;  %s6304_s4 = inlined_call_operand.vmem [shape: f32[32,32], index: 4, kind: input, shape index: {}]   ;;  %s6305_s5 = inlined_call_operand.vmem [shape: f32[32,32], index: 5, kind: input, shape index: {}]   ;;  %s6306_s6 = inlined_call_operand.hbm [shape: f32[32,512], index: 6, kind: input, shape index: {}]   ;;  %s6307_s7 = inlined_call_operand.hbm [shape: f32[1,32], index: 7, kind: input, shape index: {}]   ;;  %s6308_s8 = inlined_call_operand.hbm [shape: f32[1,32], index: 8, kind: input, shape index: {}]   ;;  %s6309_s9 = inlined_call_operand.hbm [shape: f32[1,32], index: 9, kind: input, shape index: {}]   ;;  %s6310_s10 = inlined_call_operand.vmem [shape: f32[32,32], index: 10, kind: input, shape index: {}]   ;;  %s6311_s11 = inlined_call_operand.hbm [shape: f32[32,32], index: 11, kind: input, shape index: {}]   ;;  %s6312_s12 = inlined_call_operand.hbm [shape: f32[32,512], index: 12, kind: input, shape index: {}]   ;;  %s6313_s13 = inlined_call_operand.hbm [shape: f32[1,32], index: 13, kind: input, shape index: {}]   ;;  %s6314_s14 = inlined_call_operand.hbm [shape: f32[1,32], index: 14, kind: input, shape index: {}]   ;;  %s6315_s15 = inlined_call_operand.hbm [shape: f32[1,32], index: 15, kind: input, shape index: {}]   ;;  %s6316_s16 = inlined_call_operand.hbm [shape: f32[1,32], index: 16, kind: input, shape index: {}]   ;;  %s6317_s17 = inlined_call_operand.hbm [shape: f32[1,32], index: 17, kind: input, shape index: {}]   ;;  %s6318_s18 = inlined_call_operand.hbm [shape: f32[32,64], index: 18, kind: input, shape index: {}]   ;;  %s6319_s19 = inlined_call_operand.hbm [shape: f32[1,64], index: 19, kind: input, shape index: {}]   ;;  %s6320_s20 = inlined_call_operand.vmem [shape: f32[64,32], index: 20, kind: input, shape index: {}]   ;;  %s6321_s21 = inlined_call_operand.hbm [shape: f32[1,32], index: 21, kind: input, shape index: {}]   ;;  %s6322_s22 = inlined_call_operand.hbm [shape: f32[2,8,32], index: 22, kind: output, shape index: {}]  }
   0x1   :  { %6352 = sst [smem:[#allocation42_spill]] %s6300_s0 }
   0x2   :  { %6353 = sst [smem:[#allocation43_spill]] %s6301_s1 }
   0x3   :  { %6354 = sst [smem:[#allocation44_spill]] %s6302_s2 }
   0x4   :  { %6355 = sst [smem:[#allocation45_spill]] %s6303_s3 }
   0x5   :  { %6356 = sst [smem:[#allocation46_spill]] %s6304_s4 }
   0x6   :  { %6357 = sst [smem:[#allocation47_spill]] %s6305_s5 }
   0x7   :  { %6358 = sst [smem:[#allocation48_spill]] %s6306_s6 }
   0x8   :  { %6359 = sst [smem:[#allocation49_spill]] %s6307_s7 }
   0x9   :  { %6360 = sst [smem:[#allocation50_spill]] %s6308_s8 }
   0xa   :  { %6361 = sst [smem:[#allocation51_spill]] %s6309_s9 }
   0xb   :  { %6362 = sst [smem:[#allocation52_spill]] %s6310_s10 }
   0xc   :  { %6363 = sst [smem:[#allocation53_spill]] %s6311_s11 }
   0xd   :  { %6364 = sst [smem:[#allocation54_spill]] %s6312_s12 }
   0xe   :  { %6365 = sst [smem:[#allocation55_spill]] %s6313_s13 }
   0xf   :  { %6366 = sst [smem:[#allocation56_spill]] %s6314_s14 }
  0x10   :  { %6367 = sst [smem:[#allocation57_spill]] %s6315_s15 }
  0x11   :  { %6368 = sst [smem:[#allocation58_spill]] %s6316_s16 }
  0x12   :  { %6369 = sst [smem:[#allocation59_spill]] %s6317_s17 }
  0x13   :  { %6370 = sst [smem:[#allocation60_spill]] %s6320_s20 }
  0x14   :  { %6371 = sst [smem:[#allocation61_spill]] %s6322_s22 }
  0x15   :  { %27 = vsyncpa [#allocation3], 0 }
  0x16   :  { %29 = vsyncpa [#allocation3 + $0x1], 0 }
  0x17   :  { %30 = vsyncpa [#allocation6], 0 }
  0x18   :  { %32 = vsyncpa [#allocation6 + $0x1], 0 }
  0x19   :  { %33 = vsyncpa [#allocation9], 0 }
  0x1a   :  { %34 = vsyncpa [#allocation12], 0 }
  0x1b   :  { %35 = vsyncpa [#allocation15], 0 }
  0x1c   :  { %36 = vsyncpa [#allocation18], 0 }
  0x1d   :  { %37 = vsyncpa [#allocation21], 0 }
  0x1e   :  { %38 = vsyncpa [#allocation24], 0 }
  0x1f   :  { %39 = vsyncpa [#allocation27], 0 }
  0x20   :  { %40 = vsyncpa [#allocation4], 0 }
  0x21   :  { %42 = vsyncpa [#allocation4 + $0x1], 0  ;;  %s5565_s3 = smov 0   ;;  %s5567_s28 = smov 0  }
  0x22   :  { %s5569_s29 = smov 0   ;;  %s5571_s30 = smov 0  }
  0x23 LB: > { %s5417_s4 = smov [#allocation7]   ;;  %s5586_s23 = sadd.s32 4294967295, %s5415_s30   ;;  %s5415_s30 = sphi %s5571_s30, %s6435_s30   ;;  %s5411_s29 = sphi %s5569_s29, %s6434_s29   ;;  %s5407_s28 = sphi %s5567_s28, %s6433_s28   ;;  %s5403_s3 = sphi %s5565_s3, %s6432_s3  }
  0x24   : > { %s563_s0 = sshll.u32 %s5417_s4, 4  ;;  %p4160_p0 = scmp.ge.s32.totalorder %s5415_s30, 1  ;;  %s564_s0 = int_to_ptr.vmem [resolvable:$true] %s563_s0 }
  0x25   : > { %p6338_p1 = scmp.eq.s32.totalorder %s5586_s23, 0  ;;  %p551_p2 = scmp.lt.s32.totalorder %s5415_s30, 3 }
  0x26   : > { %s5418_s5 = smov [#allocation8]   ;;  %s5419_s25 = smov [#allocation11]  }
  0x27   : > { %p5591_p3 = pnand %p4160_p0, %p551_p2  ;;  %s585_s24 = sshll.u32 %s5418_s5, 4  ;;  %s5604_s24 = int_to_ptr.vmem [resolvable:$true] %s585_s24 }
  0x28   : > { %s5606_s26 = sshll.u32 %s5419_s25, 4  ;;  %s4880_s27 = scalar_lea.vmem %s564_s0, 512  ;;  %s611_s26 = int_to_ptr.vmem [resolvable:$true] %s5606_s26 }
  0x29   : > { %s6372_s1 = scalar_select %p5591_p3, 1, 0 }
  0x2a   : > { %p4704_p5 = pneg %p5591_p3  ;;  %p4881_p8 = scmp.ne.s32.totalorder %s564_s0, %s4880_s27 }
  0x2b   : > { %6373 = sst [smem:[#allocation41_spill]] %s6372_s1  ;;  %p4888_p11 = scmp.lt.s32.totalorder %s564_s0, %s564_s0 }
  0x2c   : > { %p5600_p6 = pnand %p4704_p5, %p6338_p1  ;;  %p4889_p12 = scmp.lt.s32.totalorder %s4880_s27, %s4880_s27 }
  0x2e   : > { %p5610_p7 = pneg %p5600_p6  ;;  %p4890_p13 = por %p4889_p12, %p4888_p11 }
  0x30   : > { %p4883_p9 = pnand %p4881_p8, %p5610_p7 }
  0x32   : > { %p4884_p10 = pneg %p4883_p9 }
  0x34   : > { %p4891_p0 = pnand %p4890_p13, %p4884_p10 }
  0x36   : > { %4894 = shalt.err (!%p4891_p0)
}
  0x37   : > { %s6332_s4 = smov 128   ;;  %s6334_s5 = smov 8  }
  0x38   : > { %s6376_s20 = sld [smem:[#allocation44_spill]]  ;;  %s4906_s10 = scalar_lea.vmem %s5604_s24, 2048 }
  0x39   : > { %p4907_p2 = scmp.ne.s32.totalorder %s5604_s24, %s4906_s10  ;;  %p4914_p9 = scmp.lt.s32.totalorder %s5604_s24, %s5604_s24 }
  0x3a   : > { %p4915_p10 = scmp.lt.s32.totalorder %s4906_s10, %s4906_s10 }
  0x3b   : > { %p4909_p5 = pnand %p4907_p2, %p5610_p7 }
  0x3c   : > { %p4916_p11 = por %p4915_p10, %p4914_p9 }
  0x3d   : > { %p4910_p8 = pneg %p4909_p5 }
  0x3e   : > { %4707 = dma.hbm_to_vmem [thread:$0]  (!%p5600_p6), %s6376_s20, 512, %s564_s0, [#allocation6], %s6332_s4, %s6332_s4, %s6334_s5  }
  0x3f   : > { %p4917_p12 = pnand %p4916_p11, %p4910_p8 }
  0x41   : > { %4920 = shalt.err (!%p4917_p12)
}
  0x42   : > { %s6336_s27 = smov 512   ;;  %s6337_s1 = smov 32  }
  0x43   : > { %s6377_s0 = sld [smem:[#allocation48_spill]]  ;;  %s4932_s25 = scalar_lea.vmem %s611_s26, 16 }
  0x44   : > { %p4933_p13 = scmp.ne.s32.totalorder %s611_s26, %s4932_s25  ;;  %s4939_s10 = scalar_lea.vmem %s611_s26, 32 }
  0x45   : > { %p4940_p5 = scmp.lt.s32.totalorder %s611_s26, %s611_s26  ;;  %p4941_p8 = scmp.lt.s32.totalorder %s4939_s10, %s4932_s25 }
  0x46   : > { %p4935_p0 = pnand %p4933_p13, %p5610_p7 }
  0x47   : > { %p4942_p9 = por %p4941_p8, %p4940_p5 }
  0x48   : > { %p4936_p2 = pneg %p4935_p0 }
  0x49   : > { %4710 = dma.hbm_to_vmem [thread:$0]  (!%p5600_p6), %s6377_s0, 2048, %s5604_s24, [#allocation9], %s6336_s27, %s6336_s27, %s6337_s1  }
  0x4a   : > { %p4943_p10 = pnand %p4942_p9, %p4936_p2 }
  0x4c   : > { %4946 = shalt.err (!%p4943_p10)
}
  0x4d   : > { %s6378_s8 = sld [smem:[#allocation50_spill]]  ;;  %s5424_s24 = smov [#allocation14]  }
  0x4e   : > { %s634_s20 = sshll.u32 %s5424_s24, 4  ;;  %s5425_s22 = smov [#allocation17]   ;;  %s635_s20 = int_to_ptr.vmem [resolvable:$true] %s634_s20 }
  0x4f   : > { %s661_s0 = sshll.u32 %s5425_s22, 4  ;;  %s4958_s27 = scalar_lea.vmem %s635_s20, 512  ;;  %s662_s0 = int_to_ptr.vmem [resolvable:$true] %s661_s0 }
  0x50   : > { %p4959_p11 = scmp.ne.s32.totalorder %s635_s20, %s4958_s27  ;;  %p4966_p0 = scmp.lt.s32.totalorder %s635_s20, %s635_s20 }
  0x51   : > { %p4967_p2 = scmp.lt.s32.totalorder %s4958_s27, %s4958_s27 }
  0x52   : > { %p4961_p12 = pnand %p4959_p11, %p5610_p7 }
  0x53   : > { %4716 = dma.hbm_to_vmem [thread:$0]  (!%p5600_p6), %s6378_s8, 16, %s611_s26, [#allocation12]  }
  0x54   : > { %p4962_p13 = pneg %p4961_p12  ;;  %p4968_p5 = por %p4967_p2, %p4966_p0 }
  0x56   : > { %p4969_p8 = pnand %p4968_p5, %p4962_p13 }
  0x58   : > { %4972 = shalt.err (!%p4969_p8)
}
  0x59   : > { %s6379_s4 = smov 8   ;;  %s6380_s5 = smov 128  }
  0x5a   : > { %s6381_s11 = sld [smem:[#allocation53_spill]]  ;;  %s4984_s10 = scalar_lea.vmem %s662_s0, 16 }
  0x5b   : > { %p4985_p9 = scmp.ne.s32.totalorder %s662_s0, %s4984_s10  ;;  %s4991_s27 = scalar_lea.vmem %s662_s0, 32 }
  0x5c   : > { %p4992_p12 = scmp.lt.s32.totalorder %s662_s0, %s662_s0  ;;  %p4993_p13 = scmp.lt.s32.totalorder %s4991_s27, %s4984_s10 }
  0x5d   : > { %p4987_p10 = pnand %p4985_p9, %p5610_p7 }
  0x5e   : > { %p4994_p0 = por %p4993_p13, %p4992_p12 }
  0x5f   : > { %p4988_p11 = pneg %p4987_p10 }
  0x60   : > { %4722 = dma.hbm_to_vmem [thread:$0]  (!%p5600_p6), %s6381_s11, 512, %s635_s20, [#allocation15], %s6380_s5, %s6380_s5, %s6379_s4  }
  0x61   : > { %p4995_p2 = pnand %p4994_p0, %p4988_p11 }
  0x63   : > { %4998 = shalt.err (!%p4995_p2)
}
  0x64   : > { %s6382_s13 = sld [smem:[#allocation55_spill]]  ;;  %s5426_s20 = smov [#allocation20]  }
  0x65   : > { %s683_s26 = sshll.u32 %s5426_s20, 4  ;;  %s5427_s25 = smov [#allocation23]   ;;  %s684_s26 = int_to_ptr.vmem [resolvable:$true] %s683_s26 }
  0x66   : > { %s705_s1 = sshll.u32 %s5427_s25, 4  ;;  %s5010_s8 = scalar_lea.vmem %s684_s26, 16  ;;  %s706_s1 = int_to_ptr.vmem [resolvable:$true] %s705_s1 }
  0x67   : > { %p5011_p5 = scmp.ne.s32.totalorder %s684_s26, %s5010_s8  ;;  %s5017_s10 = scalar_lea.vmem %s684_s26, 32 }
  0x68   : > { %p5018_p10 = scmp.lt.s32.totalorder %s684_s26, %s684_s26  ;;  %p5019_p11 = scmp.lt.s32.totalorder %s5017_s10, %s5010_s8 }
  0x69   : > { %p5013_p8 = pnand %p5011_p5, %p5610_p7 }
  0x6a   : > { %4728 = dma.hbm_to_vmem [thread:$0]  (!%p5600_p6), %s6382_s13, 16, %s662_s0, [#allocation18]  }
  0x6b   : > { %p5014_p9 = pneg %p5013_p8  ;;  %p5020_p12 = por %p5019_p11, %p5018_p10 }
  0x6d   : > { %p5021_p13 = pnand %p5020_p12, %p5014_p9 }
  0x6f   : > { %5024 = shalt.err (!%p5021_p13)
}
  0x70   : > { %s6383_s15 = sld [smem:[#allocation57_spill]]  ;;  %s5036_s24 = scalar_lea.vmem %s706_s1, 16 }
  0x71   : > { %p5037_p0 = scmp.ne.s32.totalorder %s706_s1, %s5036_s24  ;;  %s5043_s22 = scalar_lea.vmem %s706_s1, 32 }
  0x72   : > { %p5044_p8 = scmp.lt.s32.totalorder %s706_s1, %s706_s1  ;;  %p5045_p4 = scmp.lt.s32.totalorder %s5043_s22, %s5036_s24 }
  0x73   : > { %p5039_p2 = pnand %p5037_p0, %p5610_p7 }
  0x74   : > { %p5046_p1 = por %p5045_p4, %p5044_p8 }
  0x75   : > { %p5040_p5 = pneg %p5039_p2 }
  0x76   : > { %4734 = dma.hbm_to_vmem [thread:$0]  (!%p5600_p6), %s6383_s15, 16, %s684_s26, [#allocation21]  }
  0x77   : > { %p5047_p10 = pnand %p5046_p1, %p5040_p5 }
  0x79   : > { %5050 = shalt.err (!%p5047_p10)
}
  0x7a   : > { %s6384_s17 = sld [smem:[#allocation59_spill]]  ;;  %s5428_s26 = smov [#allocation26]  }
  0x7b   : > { %s729_s25 = sshll.u32 %s5428_s26, 4  ;;  %s5429_s10 = smov [#allocation10]   ;;  %s730_s25 = int_to_ptr.vmem [resolvable:$true] %s729_s25 }
  0x7c   : > { %s599_s27 = sshll.u32 %s5429_s10, 4  ;;  %s5062_s0 = scalar_lea.vmem %s730_s25, 16  ;;  %s600_s27 = int_to_ptr.vmem [resolvable:$true] %s599_s27 }
  0x7d   : > { %p5063_p9 = scmp.ne.s32.totalorder %s730_s25, %s5062_s0  ;;  %s5069_s24 = scalar_lea.vmem %s730_s25, 32 }
  0x7e   : > { %p5070_p1 = scmp.lt.s32.totalorder %s730_s25, %s730_s25  ;;  %p5071_p4 = scmp.lt.s32.totalorder %s5069_s24, %s5062_s0 }
  0x7f   : > { %p5065_p11 = pnand %p5063_p9, %p5610_p7 }
  0x80   : > { %4740 = dma.hbm_to_vmem [thread:$0]  (!%p5600_p6), %s6384_s17, 16, %s706_s1, [#allocation24]  }
  0x81   : > { %p5066_p12 = pneg %p5065_p11  ;;  %p5072_p13 = por %p5071_p4, %p5070_p1 }
  0x83   : > { %p5073_p0 = pnand %p5072_p13, %p5066_p12 }
  0x85   : > { %5076 = shalt.err (!%p5073_p0)
}
  0x86   : > { %4746 = dma.hbm_to_vmem [thread:$0]  (!%p5600_p6), %s6319_s19, 16, %s730_s25, [#allocation27]  }
  0x87   : > { %s5088_s8 = scalar_lea.vmem %s600_s27, 16  ;;  %s5095_s20 = scalar_lea.vmem %s600_s27, 32 }
  0x88   : > { %p5089_p2 = scmp.ne.s32.totalorder %s600_s27, %s5088_s8  ;;  %p5096_p10 = scmp.lt.s32.totalorder %s600_s27, %s600_s27 }
  0x89   : > { %p5097_p9 = scmp.lt.s32.totalorder %s5095_s20, %s5088_s8 }
  0x8a   : > { %p5091_p5 = pnand %p5089_p2, %p5610_p7 }
  0x8b   : > { %p5098_p11 = por %p5097_p9, %p5096_p10 }
  0x8c   : > { %p5092_p8 = pneg %p5091_p5 }
  0x8e   : > { %p5099_p1 = pnand %p5098_p11, %p5092_p8 }
  0x90   : > { %5102 = shalt.err (!%p5099_p1)
}
  0x91   : > { %s6385_s7 = sld [smem:[#allocation49_spill]]  ;;  %s5430_s25 = smov [#allocation13]  }
  0x92   : > { %s621_s0 = sshll.u32 %s5430_s25, 4  ;;  %s5431_s24 = smov [#allocation16]   ;;  %s622_s0 = int_to_ptr.vmem [resolvable:$true] %s621_s0 }
  0x93   : > { %s647_s22 = sshll.u32 %s5431_s24, 4  ;;  %s5114_s1 = scalar_lea.vmem %s622_s0, 16  ;;  %s648_s22 = int_to_ptr.vmem [resolvable:$true] %s647_s22 }
  0x94   : > { %p5115_p12 = scmp.ne.s32.totalorder %s622_s0, %s5114_s1  ;;  %s5121_s8 = scalar_lea.vmem %s622_s0, 32 }
  0x95   : > { %p5122_p0 = scmp.lt.s32.totalorder %s622_s0, %s622_s0  ;;  %p5123_p2 = scmp.lt.s32.totalorder %s5121_s8, %s5114_s1 }
  0x96   : > { %p5117_p4 = pnand %p5115_p12, %p5610_p7 }
  0x97   : > { %4713 = dma.hbm_to_vmem [thread:$0]  (!%p5600_p6), %s6385_s7, 16, %s600_s27, [#allocation9]  }
  0x98   : > { %p5118_p13 = pneg %p5117_p4  ;;  %p5124_p5 = por %p5123_p2, %p5122_p0 }
  0x9a   : > { %p5125_p8 = pnand %p5124_p5, %p5118_p13 }
  0x9c   : > { %5128 = shalt.err (!%p5125_p8)
}
  0x9d   : > { %s6386_s9 = sld [smem:[#allocation51_spill]]  ;;  %s5140_s26 = scalar_lea.vmem %s648_s22, 2048 }
  0x9e   : > { %p5141_p10 = scmp.ne.s32.totalorder %s648_s22, %s5140_s26  ;;  %p5148_p1 = scmp.lt.s32.totalorder %s648_s22, %s648_s22 }
  0x9f   : > { %p5149_p12 = scmp.lt.s32.totalorder %s5140_s26, %s5140_s26 }
  0xa0   : > { %p5143_p9 = pnand %p5141_p10, %p5610_p7 }
  0xa1   : > { %p5150_p4 = por %p5149_p12, %p5148_p1 }
  0xa2   : > { %p5144_p11 = pneg %p5143_p9 }
  0xa3   : > { %4719 = dma.hbm_to_vmem [thread:$0]  (!%p5600_p6), %s6386_s9, 16, %s622_s0, [#allocation12]  }
  0xa4   : > { %p5151_p3 = pnand %p5150_p4, %p5144_p11 }
  0xa6   : > { %5154 = shalt.err (!%p5151_p3)
}
  0xa7   : > { %s6387_s10 = smov 32   ;;  %s6388_s25 = smov 512  }
  0xa8   : > { %s6389_s12 = sld [smem:[#allocation54_spill]]  ;;  %s5432_s0 = smov [#allocation19]  }
  0xa9   : > { %s672_s8 = sshll.u32 %s5432_s0, 4  ;;  %s5433_s20 = smov [#allocation22]   ;;  %s673_s8 = int_to_ptr.vmem [resolvable:$true] %s672_s8 }
  0xaa   : > { %s694_s27 = sshll.u32 %s5433_s20, 4  ;;  %s5166_s7 = scalar_lea.vmem %s673_s8, 16  ;;  %s695_s27 = int_to_ptr.vmem [resolvable:$true] %s694_s27 }
  0xab   : > { %p5167_p13 = scmp.ne.s32.totalorder %s673_s8, %s5166_s7  ;;  %s5173_s26 = scalar_lea.vmem %s673_s8, 32 }
  0xac   : > { %p5174_p2 = scmp.lt.s32.totalorder %s673_s8, %s673_s8  ;;  %p5175_p5 = scmp.lt.s32.totalorder %s5173_s26, %s5166_s7 }
  0xad   : > { %p5169_p0 = pnand %p5167_p13, %p5610_p7 }
  0xae   : > { %4725 = dma.hbm_to_vmem [thread:$0]  (!%p5600_p6), %s6389_s12, 2048, %s648_s22, [#allocation15], %s6388_s25, %s6388_s25, %s6387_s10  }
  0xaf   : > { %p5170_p3 = pneg %p5169_p0  ;;  %p5176_p8 = por %p5175_p5, %p5174_p2 }
  0xb1   : > { %p5177_p10 = pnand %p5176_p8, %p5170_p3 }
  0xb3   : > { %5180 = shalt.err (!%p5177_p10)
}
  0xb4   : > { %s6390_s14 = sld [smem:[#allocation56_spill]]  ;;  %s5192_s10 = scalar_lea.vmem %s695_s27, 16 }
  0xb5   : > { %p5193_p9 = scmp.ne.s32.totalorder %s695_s27, %s5192_s10  ;;  %s5199_s25 = scalar_lea.vmem %s695_s27, 32 }
  0xb6   : > { %p5200_p12 = scmp.lt.s32.totalorder %s695_s27, %s695_s27  ;;  %p5201_p4 = scmp.lt.s32.totalorder %s5199_s25, %s5192_s10 }
  0xb7   : > { %p5195_p11 = pnand %p5193_p9, %p5610_p7 }
  0xb8   : > { %p5202_p13 = por %p5201_p4, %p5200_p12 }
  0xb9   : > { %p5196_p1 = pneg %p5195_p11 }
  0xba   : > { %4731 = dma.hbm_to_vmem [thread:$0]  (!%p5600_p6), %s6390_s14, 16, %s673_s8, [#allocation18]  }
  0xbb   : > { %p5203_p0 = pnand %p5202_p13, %p5196_p1 }
  0xbd   : > { %5206 = shalt.err (!%p5203_p0)
}
  0xbe   : > { %s6391_s16 = sld [smem:[#allocation58_spill]]  ;;  %s5434_s0 = smov [#allocation25]  }
  0xbf   : > { %s715_s8 = sshll.u32 %s5434_s0, 4  ;;  %s5435_s20 = smov [#allocation28]   ;;  %s716_s8 = int_to_ptr.vmem [resolvable:$true] %s715_s8 }
  0xc0   : > { %s743_s26 = sshll.u32 %s5435_s20, 4  ;;  %s5218_s24 = scalar_lea.vmem %s716_s8, 512  ;;  %s744_s26 = int_to_ptr.vmem [resolvable:$true] %s743_s26 }
  0xc1   : > { %p5219_p3 = scmp.ne.s32.totalorder %s716_s8, %s5218_s24  ;;  %p5226_p8 = scmp.lt.s32.totalorder %s716_s8, %s716_s8 }
  0xc2   : > { %p5227_p10 = scmp.lt.s32.totalorder %s5218_s24, %s5218_s24 }
  0xc3   : > { %p5221_p2 = pnand %p5219_p3, %p5610_p7 }
  0xc4   : > { %4737 = dma.hbm_to_vmem [thread:$0]  (!%p5600_p6), %s6391_s16, 16, %s695_s27, [#allocation21]  }
  0xc5   : > { %p5222_p5 = pneg %p5221_p2  ;;  %p5228_p9 = por %p5227_p10, %p5226_p8 }
  0xc7   : > { %p5229_p11 = pnand %p5228_p9, %p5222_p5 }
  0xc9   : > { %5232 = shalt.err (!%p5229_p11)
}
  0xca   : > { %4743 = dma.hbm_to_vmem [thread:$0]  (!%p5600_p6), %s6318_s18, 512, %s716_s8, [#allocation24], %s6380_s5, %s6380_s5, %s6379_s4  }
  0xcb   : > { %s5244_s10 = scalar_lea.vmem %s744_s26, 16  ;;  %s5251_s25 = scalar_lea.vmem %s744_s26, 32 }
  0xcc   : > { %p5245_p1 = scmp.ne.s32.totalorder %s744_s26, %s5244_s10  ;;  %p5252_p13 = scmp.lt.s32.totalorder %s744_s26, %s744_s26 }
  0xcd   : > { %p5253_p0 = scmp.lt.s32.totalorder %s5251_s25, %s5244_s10 }
  0xce   : > { %p5247_p12 = pnand %p5245_p1, %p5610_p7 }
  0xcf   : > { %p5254_p3 = por %p5253_p0, %p5252_p13 }
  0xd0   : > { %p5248_p4 = pneg %p5247_p12 }
  0xd2   : > { %p5255_p2 = pnand %p5254_p3, %p5248_p4 }
  0xd4   : > { %5258 = shalt.err (!%p5255_p2)
}
  0xd5   : > { %4749 = dma.hbm_to_vmem [thread:$0]  (!%p5600_p6), %s6321_s21, 16, %s744_s26, [#allocation27]  }
  0xd6   : > { %s4159_s2 = sadd.s32 4294967294, %s5415_s30   ;;  %s5742_s6 = sadd.s32 1, %s5415_s30  }
  0xd7   : > { %s55_s4 = sadd.s32 1, %s5411_s29  ;;  %s52_s5 = ssub.s32 %s5415_s30, %s5742_s6 }
  0xd8   : > { %p62_p7 = scmp.ne.s32.totalorder %s5411_s29, %s5407_s28  ;;  %p53_p5 = scmp.eq.s32.totalorder %s52_s5, 0 }
  0xd9   : > { %p63_p8 = scmp.eq.s32.totalorder %s5415_s30, 0  ;;  %p68_p10 = scmp.ne.s32.totalorder %s5407_s28, %s5403_s3 }
  0xda   : > { %p538_p9 = scmp.eq.s32.totalorder %s5586_s23, 1  ;;  %p6392_p1 = scmp.eq.s32.totalorder %s5586_s23, 0 }
  0xdb   : > { %s5754_s0 = scalar_select %p53_p5, %s5411_s29, %s55_s4  }
  0xdc   : > { %p64_p11 = por %p63_p8, %p62_p7  ;;  %p5758_p12 = por %p6392_p1, %p68_p10 }
  0xdd   : > { %p5762_p6 = por %p538_p9, %p62_p7  ;;  %p544_p4 = scmp.eq.s32.totalorder %s4159_s2, 1 }
  0xde   : > { %s6393_s8 = scalar_select %p5758_p12, 1, 0 }
  0xdf   : > { %s6394_s20 = scalar_select %p5762_p6, 1, 0 }
  0xe0   : > { %p4776_p13 = scmp.lt.s32.totalorder %s5415_s30, 2  ;;  %s754_s26 = sand.u32 1, %s5411_s29  }
  0xe1   : > { %p5768_p0 = por %p544_p4, %p68_p10  ;;  %s5772_s27 = sshll.u32 %s754_s26, 3 }
  0xe2   : > { %s4178_s22 = sshll.u32 %s5415_s30, 7  ;;  %s6396_s7 = sld [smem:[#allocation42_spill]] }
  0xe3   : > { %s6395_s24 = scalar_select %p5768_p0, 1, 0 }
  0xe4   : > { %s758_s4 = scalar_lea.vmem [#allocation2], %s5772_s27  ;;  %p5781_p3 = pnand %p4776_p13, %p64_p11 }
  0xe5   : > { %s765_s2 = sshll.u32 %s758_s4, 4  ;;  %s6398_s12 = sld [smem:[#allocation43_spill]]  ;;  %s766_s2 = int_to_ptr.vmem [resolvable:$true] %s765_s2 }
  0xe6   : > { %s755_s10 = scalar_lea.sflag [#allocation3], %s754_s26  ;;  %p5261_p7 = pneg %p5781_p3 }
  0xe8   : > { %s5778_s1 = scalar_lea.hbm %s6396_s7, %s4178_s22  ;;  %s5264_s15 = scalar_lea.hbm %s6396_s7, 256 }
  0xe9   : > { %s5259_s25 = scalar_lea.hbm %s5778_s1, 128  ;;  %p5265_p10 = scmp.lt.s32.totalorder %s5778_s1, %s6396_s7 }
  0xea   : > { %p5260_p2 = scmp.ne.s32.totalorder %s5778_s1, %s5259_s25  ;;  %p5266_p9 = scmp.lt.s32.totalorder %s5264_s15, %s5259_s25 }
  0xeb   : > { %s5788_s13 = scalar_lea.hbm %s6398_s12, %s4178_s22 }
  0xec   : > { %p5262_p5 = pnand %p5261_p7, %p5260_p2  ;;  %p5267_p11 = por %p5266_p9, %p5265_p10 }
  0xee   : > { %p5263_p8 = pneg %p5262_p5 }
  0xf0   : > { %p5268_p1 = pnand %p5267_p11, %p5263_p8 }
  0xf2   : > { %5271 = shalt.err (!%p5268_p1)
}
  0xf3   : > { %s5272_s9 = scalar_lea.vmem %s766_s2, 128  ;;  %s5436_s11 = smov [#allocation2]  }
  0xf4   : > { %p5273_p4 = scmp.ne.s32.totalorder %s766_s2, %s5272_s9  ;;  %s5277_s26 = sshll.u32 %s5436_s11, 4  ;;  %s5278_s26 = int_to_ptr.vmem [resolvable:$false] %s5277_s26 }
  0xf5   : > { %s5279_s14 = scalar_lea.vmem %s5278_s26, 256  ;;  %p5280_p5 = scmp.lt.s32.totalorder %s766_s2, %s5278_s26 }
  0xf6   : > { %p5275_p13 = pnand %p5273_p4, %p5261_p7  ;;  %p5281_p0 = scmp.lt.s32.totalorder %s5279_s14, %s5272_s9 }
  0xf8   : > { %p5276_p2 = pneg %p5275_p13  ;;  %p5282_p6 = por %p5281_p0, %p5280_p5 }
  0xfa   : > { %p5283_p12 = pnand %p5282_p6, %p5276_p2 }
  0xfc   : > { %5286 = shalt.err (!%p5283_p12)
}
  0xfd   : > { %4753 = dma.hbm_to_vmem [thread:$0]  (!%p5781_p3), %s5778_s1, 128, %s766_s2, %s755_s10  }
  0xfe   : > { %s772_s15 = sand.u32 1, %s5415_s30   ;;  %s776_s16 = scalar_lea.vmem [#allocation5], %s5772_s27 }
  0xff   : > { %s783_s17 = sshll.u32 %s776_s16, 4  ;;  %s773_s22 = scalar_lea.sflag [#allocation6], %s772_s15  ;;  %s784_s17 = int_to_ptr.vmem [resolvable:$true] %s783_s17 }
 0x100   : > { %s5287_s25 = scalar_lea.hbm %s5788_s13, 128  ;;  %s5292_s11 = scalar_lea.hbm %s6398_s12, 256 }
 0x101   : > { %p5288_p8 = scmp.ne.s32.totalorder %s5788_s13, %s5287_s25  ;;  %p5293_p0 = scmp.lt.s32.totalorder %s5788_s13, %s6398_s12 }
 0x102   : > { %p5294_p10 = scmp.lt.s32.totalorder %s5292_s11, %s5287_s25 }
 0x103   : > { %p5290_p12 = pnand %p5288_p8, %p5261_p7 }
 0x104   : > { %p5295_p9 = por %p5294_p10, %p5293_p0 }
 0x105   : > { %p5291_p6 = pneg %p5290_p12 }
 0x107   : > { %p5296_p11 = pnand %p5295_p9, %p5291_p6 }
 0x109   : > { %5299 = shalt.err (!%p5296_p11)
}
 0x10a   : > { %s5300_s27 = scalar_lea.vmem %s784_s17, 128  ;;  %s5437_s1 = smov [#allocation5]  }
 0x10b   : > { %p5301_p1 = scmp.ne.s32.totalorder %s784_s17, %s5300_s27  ;;  %s5305_s2 = sshll.u32 %s5437_s1, 4  ;;  %s5306_s2 = int_to_ptr.vmem [resolvable:$false] %s5305_s2 }
 0x10c   : > { %s5307_s10 = scalar_lea.vmem %s5306_s2, 256  ;;  %p5308_p2 = scmp.lt.s32.totalorder %s784_s17, %s5306_s2 }
 0x10d   : > { %p5303_p4 = pnand %p5301_p1, %p5261_p7  ;;  %p5309_p5 = scmp.lt.s32.totalorder %s5307_s10, %s5300_s27 }
 0x10f   : > { %p5304_p13 = pneg %p5303_p4  ;;  %p5310_p8 = por %p5309_p5, %p5308_p2 }
 0x111   : > { %p5311_p12 = pnand %p5310_p8, %p5304_p13 }
 0x113   : > { %5314 = shalt.err (!%p5311_p12)
}
 0x114   : > { %4756 = dma.hbm_to_vmem [thread:$0]  (!%p5781_p3), %s5788_s13, 128, %s784_s17, %s773_s22  }
 0x115   : > { %s6399_s15 = sld [smem:[#allocation41_spill]] }
 0x11b   : > { %p6400_p6 = scmp.ne.s32.totalorder %s6399_s15, 0 }
 0x11c   : > { %s5833_s16 = sand.u32 (!%p6400_p6), 1, %s5407_s28   ;;  %p6401_p7 = scmp.ne.s32.totalorder (!%p6400_p6), %s6393_s8, 0 }
 0x11d   : > { %792 = sbr.rel (%p6400_p6) target bundleno = 4970 (0x136a), region = 108  ;;  %s5836_s25 = sshll.u32 (!%p6400_p6), %s5833_s16, 3 }
 0x11e   : > { %s795_s4 = scalar_lea.sflag (!%p6400_p6), [#allocation3], %s5833_s16  ;;  %s798_s9 = scalar_lea.vmem (!%p6400_p6), [#allocation2], %s5836_s25 }
 0x122   : > { %5358 = dma.done.wait (%p6401_p7), %s795_s4, 128  }
 0x123   : > { %5360 = vsyncadd (%p6401_p7), %s795_s4, 4294967168  ;;  %s803_s13 = sand.u32 1, %s5586_s23   ;;  %s807_s17 = scalar_lea.vmem [#allocation5], %s5836_s25 }
 0x124   : > { %s804_s5 = scalar_lea.sflag [#allocation6], %s803_s13 }
 0x125   : > { %5362 = dma.done.wait (%p6401_p7), %s804_s5, 128  }
 0x126   : > { %5364 = vsyncadd (%p6401_p7), %s804_s5, 4294967168  ;;  %p6402_p3 = scmp.eq.s32.totalorder %s5586_s23, 0 }
 0x128   : > { %5366 = dma.done.wait (%p6402_p3), [#allocation6], 512   ;;  %p6403_p0 = pmov %p6402_p3 }
 0x12a   : > { %5368 = vsyncadd (%p6403_p0), [#allocation6], 4294966784  ;;  %p6404_p10 = pmov %p6403_p0 }
 0x12b   : > { %p6405_p9 = pmov %p6403_p0 }
 0x12c   : > { %5370 = dma.done.wait (%p6404_p10), [#allocation9], 2064  }
 0x12d   : > { %5372 = vsyncadd (%p6405_p9), [#allocation9], 4294965232  ;;  %p6406_p11 = pmov %p6403_p0 }
 0x12e   : > { %p6407_p1 = pmov %p6403_p0 }
 0x12f   : > { %5374 = dma.done.wait (%p6406_p11), [#allocation12], 32  }
 0x130   : > { %5376 = vsyncadd (%p6407_p1), [#allocation12], 4294967264  ;;  %p6408_p4 = pmov %p6403_p0 }
 0x131   : > { %p6409_p13 = pmov %p6403_p0 }
 0x132   : > { %5378 = dma.done.wait (%p6408_p4), [#allocation15], 2560  }
 0x133   : > { %5380 = vsyncadd (%p6409_p13), [#allocation15], 4294964736  ;;  %p6410_p2 = pmov %p6403_p0 }
 0x134   : > { %p6411_p5 = pmov %p6403_p0 }
 0x135   : > { %5382 = dma.done.wait (%p6410_p2), [#allocation18], 32  }
 0x136   : > { %5384 = vsyncadd (%p6411_p5), [#allocation18], 4294967264  ;;  %p6412_p8 = pmov %p6403_p0 }
 0x137   : > { %p6413_p12 = pmov %p6403_p0 }
 0x138   : > { %5386 = dma.done.wait (%p6412_p8), [#allocation21], 32  }
 0x139   : > { %5388 = vsyncadd (%p6413_p12), [#allocation21], 4294967264  ;;  %p6414_p6 = pmov %p6403_p0 }
 0x13a   : > { %p6415_p7 = pmov %p6403_p0 }
 0x13b   : > { %5390 = dma.done.wait (%p6414_p6), [#allocation24], 528  }
 0x13c   : > { %5392 = vsyncadd (%p6415_p7), [#allocation24], 4294966768  ;;  %p6416_p3 = pmov %p6403_p0 }
 0x13e   : > { %5394 = dma.done.wait (%p6416_p3), [#allocation27], 32  }
 0x13f   : > { %5396 = vsyncadd (%p6403_p0), [#allocation27], 4294967264  ;;  %v5438_v0 = vmov 0.0   ;;  %vm5439_vm0 = vmmov 0   ;;  %s6417_s11 = sld [smem:[#allocation46_spill]]  ;;  %v5918_v9 = vld [vmem:[%s798_s9] sm:$0xff] }
 0x140   : > { %4374 = vmatprep.subr.mxu0 %v5438_v0  ;;  %4385 = vmatprep.subr.mxu1 %v5438_v0  ;;  %s6418_s2 = sld [smem:[#allocation47_spill]]  ;;  %vm968_vm1 = vcmask 261120   ;;  %v964_v10 = vld [vmem:[#allocation8 + $0x68] sm:$0xff]  ;;  %v963_v11 = vld [vmem:[#allocation8 + $0x60] sm:$0xff]  ;;  %v966_v18 = vld [vmem:[#allocation8 + $0x78] sm:$0xff]  ;;  %vm1254_vm2 = vcmask 64512  }
 0x141   : > { %4382 = vmatprep.mubr.msk.f32.mxu0 %vm5439_vm0, %v5438_v0  ;;  %4393 = vmatprep.mubr.msk.f32.mxu1 %vm5439_vm0, %v5438_v0  ;;  %v960_v12 = vld [vmem:[#allocation8 + $0x48] sm:$0xff]  ;;  %v959_v13 = vld [vmem:[#allocation8 + $0x40] sm:$0xff]  ;;  %v965_v19 = vld [vmem:[#allocation8 + $0x70] sm:$0xff]  ;;  %s5440_s9 = smov 112   ;;  %s5441_s1 = smov 120   ;;  %vm1578_vm3 = vcmask 130048  }
 0x142   : > { %v956_v14 = vld [vmem:[#allocation8 + $0x28] sm:$0xff]  ;;  %v955_v15 = vld [vmem:[#allocation8 + $0x20] sm:$0xff]  ;;  %v962_v20 = vld [vmem:[#allocation8 + $0x58] sm:$0xff]  ;;  %s5442_s10 = smov 104   ;;  %s6350_s15 = smov 8   ;;  %vm1580_vm4 = vcmask 195584  }
 0x143   : > { %v952_v16 = vld [vmem:[#allocation8 + $0x8] sm:$0xff]  ;;  %v951_v17 = vld [vmem:[#allocation8] sm:$0xff]  ;;  %v961_v21 = vld [vmem:[#allocation8 + $0x50] sm:$0xff]  ;;  %s6342_s4 = smov 24   ;;  %s6349_s13 = smov 16   ;;  %vm3805_vm5 = vcmask 523264  }
 0x144   : > { %v958_v22 = vld [vmem:[#allocation8 + $0x38] sm:$0xff]  ;;  %v957_v23 = vld [vmem:[#allocation8 + $0x30] sm:$0xff]  ;;  %s6419_s22 = sld [smem:[#allocation45_spill]]  ;;  %s6345_s26 = smov 32  }
 0x145   : > { %v946_v1 = vld [vmem:[%s6417_s11 + $0x18] sm:$0xff]  ;;  %v945_v2 = vld [vmem:[%s6417_s11 + $0x10] sm:$0xff]  ;;  %v944_v5 = vld [vmem:[%s6417_s11 + $0x8] sm:$0xff]  ;;  %s6343_s14 = smov 64   ;;  %s6420_s8 = sld [smem:[#allocation52_spill]] }
 0x146   : > { %v950_v3 = vld [vmem:[%s6418_s2 + $0x18] sm:$0xff]  ;;  %4375 = vmatpush3.msra.mxu0 %v946_v1  ;;  %v949_v4 = vld [vmem:[%s6418_s2 + $0x10] sm:$0xff]  ;;  %v948_v6 = vld [vmem:[%s6418_s2 + $0x8] sm:$0xff]  ;;  %s3911_s27 = scalar_lea.sflag [#allocation4], %s5833_s16  ;;  %p6429_p9 = scmp.ne.s32.totalorder %s6394_s20, 0 }
 0x147   : > { %4386 = vmatpush3.msra.mxu1 %v950_v3  ;;  %4376 = vmatprep.subr.mxu0 %v5438_v0  ;;  %v943_v7 = vld [vmem:[%s6417_s11] sm:$0xff]  ;;  %v954_v24 = vld [vmem:[#allocation8 + $0x18] sm:$0xff]  ;;  %v953_v25 = vld [vmem:[#allocation8 + $0x10] sm:$0xff] }
 0x148   : > { %4387 = vmatprep.subr.mxu1 %v5438_v0  ;;  %4377 = vmatpush3.msra.mxu0 %v945_v2  ;;  %v947_v8 = vld [vmem:[%s6418_s2] sm:$0xff] }
 0x149   : > { %4388 = vmatpush3.msra.mxu1 %v949_v4  ;;  %4378 = vmatprep.subr.mxu0 %v5438_v0 }
 0x14a   : > { %4389 = vmatprep.subr.mxu1 %v5438_v0  ;;  %4379 = vmatpush3.msra.mxu0 %v944_v5  ;;  %v5975_v55 = vld [vmem:[%s6419_s22 + $0x18] sm:$0xff]  ;;  %v5980_v56 = vld [vmem:[%s6419_s22 + $0x10] sm:$0xff]  ;;  %v5987_v57 = vld [vmem:[%s6419_s22 + $0x8] sm:$0xff] }
 0x14b   : > { %4390 = vmatpush3.msra.mxu1 %v948_v6  ;;  %4380 = vmatprep.subr.mxu0 %v5438_v0  ;;  %v5994_v58 = vld [vmem:[%s6419_s22] sm:$0xff] }
 0x14c   : > { %4391 = vmatprep.subr.mxu1 %v5438_v0  ;;  %4381 = vmatpush3.msra.mxu0 %v943_v7 }
 0x14d   : > { %4392 = vmatpush3.msra.mxu1 %v947_v8  ;;  %4383 = vmatmul.mubr.msk.f32.vlgmr.msra.gmra.mxu0 %vm968_vm1, %v5918_v9 }
 0x14e   : > { %4394 = vmatmul.mubr.msk.f32.vlgmr.msra.gmra.mxu1 %vm968_vm1, %v5918_v9  ;;  %1136 = vmatprep.subr.mxu0 %v964_v10 }
 0x14f   : > { %1176 = vmatprep.mubr.f32.mxu0 %v5438_v0  ;;  %1137 = vmatpush1.msra.mxu0 %v963_v11 }
 0x150   : > { %1247 = vmatprep.mubr.f32.mxu1 %v5438_v0  ;;  %1138 = vmatprep.subr.mxu0 %v960_v12 }
 0x151   : > { %1139 = vmatpush1.msra.mxu0 %v959_v13  ;;  %1207 = vmatprep.subr.mxu1 %v966_v18 }
 0x152   : > { %1140 = vmatprep.subr.mxu0 %v956_v14  ;;  %1208 = vmatpush1.msra.mxu1 %v965_v19 }
 0x153   : > { %1141 = vmatpush1.msra.mxu0 %v955_v15  ;;  %1209 = vmatprep.subr.mxu1 %v962_v20 }
 0x154   : > { %1142 = vmatprep.subr.mxu0 %v952_v16  ;;  %1210 = vmatpush1.msra.mxu1 %v961_v21  ;;  %v6027_v16 = vld [vmem:[#allocation7] sm:$0xff] }
 0x155   : > { %1143 = vmatpush1.msra.mxu0 %v951_v17  ;;  %1211 = vmatprep.subr.mxu1 %v958_v22 }
 0x156   : > { %4202 = vmatmul.mubr.msk.f32.vlgmr.msra.gmra.mxu0 %vm968_vm1, %v5918_v9  ;;  %4396 = vmatprep.subr.mxu0 %v5438_v0 }
 0x157   : > { %4398 = vmatprep.mubr.msk.f32.mxu0 %vm5439_vm0, %v5438_v0  ;;  %1212 = vmatpush1.msra.mxu1 %v957_v23  ;;  %v6047_v23 = vld [vmem:[#allocation7 + $0x8] sm:$0xff] }
 0x158   : > { %1213 = vmatprep.subr.mxu1 %v954_v24 }
 0x159   : > { %1214 = vmatpush1.msra.mxu1 %v953_v25 }
 0x15a   : > { %4203 = vmatmul.mubr.msk.f32.vlgmr.msra.gmra.mxu1 %vm968_vm1, %v5918_v9  ;;  %4411 = vmatprep.subr.mxu1 %v5438_v0 }
 0x15b   : > { %4413 = vmatprep.mubr.msk.f32.mxu1 %vm5439_vm0, %v5438_v0 }
 0x20d   : > { %v1038_v26 = vpop.f32.mrf.mxu0 }
 0x20e   : > { %v1108_v27 = vpop.f32.mrf.mxu1  ;;  %1411 = vrot.lane.b32.xlu1 %v1038_v26, %s5440_s9  ;;  %1333 = vrot.lane.b32.xlu0 %v1038_v26, %s5441_s1 }
 0x20f   : > { %4397 = vmatpush3.xpose.msk.msra.mxu0 %vm1254_vm2, %v1038_v26  ;;  %v4384_v28 = vpop.f32.mrf.mxu0 }
 0x210   : > { %v4395_v29 = vpop.f32.mrf.mxu1  ;;  %4401 = vmatprep.subr.mxu0 %v5438_v0 }
 0x212   : > { %4399 = vmatmul.mubr.msk.f32.vlgmr.msra.gmra.mxu0 %vm1254_vm2, %v1108_v27  ;;  %1489 = vrot.lane.b32.xlu1 %v1038_v26, %s5442_s10 }
 0x213   : > { %1331 = vrot.lane.b32.xlu0 %v1108_v27, %s5441_s1  ;;  %4403 = vmatprep.mubr.msk.f32.mxu0 %vm5439_vm0, %v5438_v0 }
 0x216   : > { %1487 = vrot.lane.b32.xlu1 %v1108_v27, %s5442_s10  ;;  %v1178_v36 = vpop.f32.mrf.mxu0 }
 0x217   : > { %1409 = vrot.lane.b32.xlu0 %v1108_v27, %s5440_s9  ;;  %v6058_v27 = vld [vmem:[#allocation7 + $0x10] sm:$0xff] }
 0x218   : > { %v1180_v37 = vpop.f32.mrf.mxu0 }
 0x21a   : > { %v1249_v40 = vpop.f32.mrf.mxu1 }
 0x21c   : > { %v1251_v41 = vpop.f32.mrf.mxu1 }
 0x280   : > { %v1412_v30 = vpop.permute.xlu1 %1411  ;;  %v1334_v31 = vpop.permute.xlu0 %1333 }
 0x281   : > { %4402 = vmatpush3.xpose.msk.msra.mxu0 %vm1254_vm2, %v1334_v31 }
 0x282   : > { %4406 = vmatprep.subr.mxu0 %v5438_v0 }
 0x284   : > { %v1490_v32 = vpop.permute.xlu1 %1489 }
 0x285   : > { %v1332_v33 = vpop.permute.xlu0 %1331  ;;  %4412 = vmatpush3.xpose.msk.msra.mxu1 %vm1254_vm2, %v1490_v32 }
 0x286   : > { %4404 = vmatmul.mubr.msk.f32.vlgmr.msra.gmra.mxu0 %vm1254_vm2, %v1332_v33  ;;  %4427 = vmatprep.subr.mxu1 %v5438_v0 }
 0x287   : > { %4407 = vmatpush3.xpose.msk.msra.mxu0 %vm1254_vm2, %v1412_v30  ;;  %4408 = vmatprep.mubr.msk.f32.mxu0 %vm5439_vm0, %v5438_v0  ;;  %v6065_v30 = vld [vmem:[#allocation7 + $0x18] sm:$0xff] }
 0x288   : > { %v1488_v34 = vpop.permute.xlu1 %1487  ;;  %4416 = vmatprep.subr.mxu0 %v5438_v0 }
 0x289   : > { %v1410_v35 = vpop.permute.xlu0 %1409  ;;  %4414 = vmatmul.mubr.msk.f32.vlgmr.msra.gmra.mxu1 %vm1254_vm2, %v1488_v34 }
 0x28a   : > { %4409 = vmatmul.mubr.msk.f32.vlgmr.msra.gmra.mxu0 %vm1254_vm2, %v1410_v35  ;;  %4428 = vmatpush3.msra.mxu1 %v1178_v36  ;;  %v4218_v36 = vld [vmem:[#allocation10] ss:$0 sm:$0xff] }
 0x28b   : > { %4424 = vmatprep.mubr.msk.f32.mxu0 %vm5439_vm0, %v5438_v0  ;;  %4429 = vmatprep.mubr.msk.f32.mxu1 %vm5439_vm0, %v5438_v0 }
 0x28c   : > { %4432 = vmatprep.subr.mxu1 %v5438_v0  ;;  %4417 = vmatpush3.msra.mxu0 %v5975_v55 }
 0x28d   : > { %4418 = vmatprep.subr.mxu0 %v5438_v0 }
 0x28e   : > { %4419 = vmatpush3.msra.mxu0 %v5980_v56 }
 0x28f   : > { %4420 = vmatprep.subr.mxu0 %v5438_v0 }
 0x290   : > { %4421 = vmatpush3.msra.mxu0 %v5987_v57 }
 0x291   : > { %4422 = vmatprep.subr.mxu0 %v5438_v0 }
 0x292   : > { %4423 = vmatpush3.msra.mxu0 %v5994_v58 }
 0x293   : > { %4437 = vmatprep.subr.mxu0 %v5438_v0 }
 0x2d2   : > { %v1327_v38 = vpop.f32.mrf.mxu0 }
 0x2d4   : > { %v4400_v39 = vpop.f32.mrf.mxu0 }
 0x346   : > { %v1405_v42 = vpop.f32.mrf.mxu0 }
 0x347   : > { %1566 = vrot.lane.b32.xlu0 %v1405_v42, %s6350_s15  ;;  %s6422_s15 = smov 16  }
 0x348   : > { %v4405_v43 = vpop.f32.mrf.mxu0 }
 0x349   : > { %v1561_v44 = vpop.f32.mrf.mxu1 }
 0x34a   : > { %v1483_v45 = vpop.f32.mrf.mxu0 }
 0x34b   : > { %1574 = vrot.lane.b32.xlu0 %v1561_v44, %s6342_s4  ;;  %1570 = vrot.lane.b32.xlu1 %v1483_v45, %s6349_s13  ;;  %v4415_v46 = vpop.f32.mrf.mxu1  ;;  %s6347_s4 = smov 96   ;;  %s6423_s13 = smov 24  }
 0x34c   : > { %v4410_v47 = vpop.f32.mrf.mxu0 }
 0x3b9   : > { %v1567_v48 = vpop.permute.xlu0 %1566 }
 0x3ba   : > { %v1577_v49 = vsel %vm1254_vm2, %v1327_v38, %v1567_v48 }
 0x3bd   : > { %v1575_v50 = vpop.permute.xlu0 %1574  ;;  %v1571_v51 = vpop.permute.xlu1 %1570 }
 0x3be   : > { %v1579_v52 = vsel %vm1578_vm3, %v1577_v49, %v1571_v51 }
 0x3bf   : > { %v1581_v53 = vsel %vm1580_vm4, %v1579_v52, %v1575_v50  ;;  %v2334_v52 = vld [vmem:[%s6420_s8 + $0x18] sm:$0xff] }
 0x3c0   : > { %v1582_v54 = vsel %vm968_vm1, %v1581_v53, -inf }
 0x3c1   : > { %1583 = vmax.xlane.f32.xlu1 %v1582_v54  ;;  %v2331_v54 = vld [vmem:[%s6420_s8] sm:$0xff] }
 0x44a   : > { %v1584_v59 = vpop.xlane.xlu1 %1583 }
 0x44b   : > { %v1585_v60 = vsub.f32 %v1581_v53, %v1584_v59  ;;  %v2332_v53 = vld [vmem:[%s6420_s8 + $0x8] sm:$0xff]  ;;  %v6093_v59 = vld [vmem:[%s807_s17] sm:$0xff]  ;;  %s6421_s17 = smov 8  }
 0x44d   : > { %v1586_v61 = vmul.f32 1.442695, %v1585_v60  ;;  %v2338_v60 = vld [vmem:[#allocation14 + $0x18] sm:$0xff] }
 0x44f   : > { %4855 = vpow2.f32 %v1586_v61  ;;  %v2337_v61 = vld [vmem:[#allocation14 + $0x10] sm:$0xff] }
 0x45c   : > { %v4856_v62 = vpop.eup %4855 }
 0x45d   : > { %4425 = vmatmul.mubr.msk.f32.vlgmr.msra.gmra.mxu0 %vm968_vm1, %v4856_v62 }
 0x45e   : > { %4438 = vmatpush3.msra.mxu0 %v1249_v40  ;;  %4439 = vmatprep.mubr.msk.f32.mxu0 %vm5439_vm0, %v5438_v0 }
 0x45f   : > { %4447 = vmatprep.subr.mxu0 %v5438_v0 }
 0x51d   : > { %v1657_v63 = vpop.f32.mrf.mxu0 }
 0x51e   : > { %4857 = vrcp.f32 %v1657_v63  ;;  %v2335_v63 = vld [vmem:[#allocation14] sm:$0xff] }
 0x51f   : > { %v4426_v1 = vpop.f32.mrf.mxu0 }
 0x520   : > { %v2352_v1 = vld [vmem:[#allocation16 + $0x68] sm:$0xff] }
 0x52b   : > { %v4858_v2 = vpop.eup %4857 }
 0x52c   : > { %v1662_v3 = vmul.f32 %v4858_v2, %v4856_v62  ;;  %v2336_v62 = vld [vmem:[#allocation14 + $0x8] sm:$0xff]  ;;  %v2351_v2 = vld [vmem:[#allocation16 + $0x60] sm:$0xff] }
 0x52e   : > { %1736 = vrot.lane.b32.xlu0 %v1662_v3, %s5441_s1  ;;  %4430 = vmatmul.mubr.msk.f32.vlgmr.msra.gmra.mxu1 %vm1254_vm2, %v1662_v3 }
 0x52f   : > { %4433 = vmatpush3.msra.mxu1 %v1180_v37  ;;  %4434 = vmatprep.mubr.msk.f32.mxu1 %vm5439_vm0, %v5438_v0 }
 0x530   : > { %4442 = vmatprep.subr.mxu1 %v5438_v0 }
 0x532   : > { %1884 = vrot.lane.b32.xlu0 %v1662_v3, %s5442_s10 }
 0x536   : > { %1810 = vrot.lane.b32.xlu0 %v1662_v3, %s5440_s9  ;;  %v2348_v3 = vld [vmem:[#allocation16 + $0x48] sm:$0xff] }
 0x5a0   : > { %v1737_v4 = vpop.permute.xlu0 %1736 }
 0x5a1   : > { %4435 = vmatmul.mubr.msk.f32.vlgmr.msra.gmra.mxu1 %vm1254_vm2, %v1737_v4  ;;  %v2347_v4 = vld [vmem:[#allocation16 + $0x40] sm:$0xff] }
 0x5a2   : > { %4443 = vmatpush3.msra.mxu1 %v1251_v41  ;;  %4444 = vmatprep.mubr.msk.f32.mxu1 %vm5439_vm0, %v5438_v0 }
 0x5a3   : > { %4458 = vmatprep.subr.mxu1 %v5438_v0 }
 0x5a4   : > { %v1885_v5 = vpop.permute.xlu0 %1884 }
 0x5a5   : > { %4445 = vmatmul.mubr.msk.f32.vlgmr.msra.gmra.mxu1 %vm1254_vm2, %v1885_v5  ;;  %v2344_v5 = vld [vmem:[#allocation16 + $0x28] sm:$0xff] }
 0x5a6   : > { %4466 = vmatprep.mubr.msk.f32.mxu1 %vm5439_vm0, %v5438_v0 }
 0x5a8   : > { %v1811_v6 = vpop.permute.xlu0 %1810 }
 0x5a9   : > { %4440 = vmatmul.mubr.msk.f32.vlgmr.msra.gmra.mxu0 %vm1254_vm2, %v1811_v6  ;;  %v2343_v6 = vld [vmem:[#allocation16 + $0x20] sm:$0xff] }
 0x5aa   : > { %4455 = vmatprep.mubr.msk.f32.mxu0 %vm5439_vm0, %v5438_v0 }
 0x5ee   : > { %v1732_v7 = vpop.f32.mrf.mxu1 }
 0x5ef   : > { %2042 = vrot.lane.b32.xlu0 %v1732_v7, %s6347_s4 }
 0x5f0   : > { %v4431_v8 = vpop.f32.mrf.mxu1 }
 0x5f1   : > { %v2339_v8 = vld [vmem:[#allocation16] sm:$0xff] }
 0x661   : > { %v1806_v10 = vpop.f32.mrf.mxu1  ;;  %v2043_v17 = vpop.permute.xlu0 %2042 }
 0x663   : > { %v4436_v11 = vpop.f32.mrf.mxu1 }
 0x665   : > { %v1954_v12 = vpop.f32.mrf.mxu1 }
 0x666   : > { %2220 = vrot.lane.b32.xlu1 %v1954_v12, %s6345_s26  ;;  %4448 = vmatpush3.msra.mxu0 %v1954_v12 }
 0x667   : > { %v4446_v13 = vpop.f32.mrf.mxu1  ;;  %4449 = vmatprep.subr.mxu0 %v5438_v0 }
 0x669   : > { %v1880_v14 = vpop.f32.mrf.mxu0 }
 0x66a   : > { %2214 = vrot.lane.b32.xlu1 %v1732_v7, %s6345_s26  ;;  %2046 = vrot.lane.b32.xlu0 %v1880_v14, %s6347_s4 }
 0x66b   : > { %4450 = vmatpush3.msra.mxu0 %v1880_v14  ;;  %v4441_v15 = vpop.f32.mrf.mxu0 }
 0x66c   : > { %4451 = vmatprep.subr.mxu0 %v5438_v0 }
 0x66d   : > { %4452 = vmatpush3.msra.mxu0 %v1806_v10 }
 0x66e   : > { %4453 = vmatprep.subr.mxu0 %v5438_v0  ;;  %2044 = vrot.lane.b32.xlu0 %v1806_v10, %s6347_s4 }
 0x66f   : > { %4454 = vmatpush3.msra.mxu0 %v1732_v7 }
 0x670   : > { %4469 = vmatprep.subr.mxu0 %v5438_v0  ;;  %4456 = vmatmul.mubr.msk.f32.vlgmr.msra.gmra.mxu0 %vm968_vm1, %v6027_v16 }
 0x671   : > { %4477 = vmatprep.mubr.msk.f32.mxu0 %vm5439_vm0, %v5438_v0 }
 0x672   : > { %2132 = vrot.lane.b32.xlu0 %v1880_v14, %s6343_s14 }
 0x676   : > { %2048 = vrot.lane.b32.xlu0 %v1954_v12, %s6347_s4 }
 0x67a   : > { %2134 = vrot.lane.b32.xlu0 %v1954_v12, %s6343_s14 }
 0x67e   : > { %2130 = vrot.lane.b32.xlu0 %v1806_v10, %s6343_s14 }
 0x682   : > { %2218 = vrot.lane.b32.xlu0 %v1880_v14, %s6345_s26  ;;  %v4222_v14 = vld [vmem:[#allocation11] ss:$0 sm:$0xff] }
 0x686   : > { %2128 = vrot.lane.b32.xlu0 %v1732_v7, %s6343_s14  ;;  %v2340_v7 = vld [vmem:[#allocation16 + $0x8] sm:$0xff]  ;;  %s6427_s14 = sld [smem:[#allocation60_spill]] }
 0x68a   : > { %2216 = vrot.lane.b32.xlu0 %v1806_v10, %s6345_s26  ;;  %s6428_s26 = sld [smem:[#allocation61_spill]] }
 0x6d8   : > { %v2221_v25 = vpop.permute.xlu1 %2220 }
 0x6dc   : > { %v2047_v18 = vpop.permute.xlu0 %2046  ;;  %v2215_v31 = vpop.permute.xlu1 %2214 }
 0x6e0   : > { %v2045_v19 = vpop.permute.xlu0 %2044 }
 0x6e4   : > { %v2133_v20 = vpop.permute.xlu0 %2132 }
 0x6e8   : > { %v2049_v21 = vpop.permute.xlu0 %2048 }
 0x6e9   : > { %4459 = vmatpush3.msra.mxu1 %v2049_v21 }
 0x6ea   : > { %4460 = vmatprep.subr.mxu1 %v5438_v0 }
 0x6eb   : > { %4461 = vmatpush3.msra.mxu1 %v2047_v18 }
 0x6ec   : > { %4462 = vmatprep.subr.mxu1 %v5438_v0  ;;  %v2135_v22 = vpop.permute.xlu0 %2134 }
 0x6ed   : > { %4463 = vmatpush3.msra.mxu1 %v2045_v19  ;;  %4470 = vmatpush3.msra.mxu0 %v2135_v22  ;;  %v2354_v22 = vld [vmem:[#allocation16 + $0x78] sm:$0xff] }
 0x6ee   : > { %4464 = vmatprep.subr.mxu1 %v5438_v0  ;;  %4471 = vmatprep.subr.mxu0 %v5438_v0 }
 0x6ef   : > { %4465 = vmatpush3.msra.mxu1 %v2043_v17  ;;  %4472 = vmatpush3.msra.mxu0 %v2133_v20  ;;  %v4223_v17 = vld [vmem:[#allocation13] ss:$0 sm:$0xff] }
 0x6f0   : > { %4480 = vmatprep.subr.mxu1 %v5438_v0  ;;  %v2131_v24 = vpop.permute.xlu0 %2130  ;;  %4473 = vmatprep.subr.mxu0 %v5438_v0 }
 0x6f1   : > { %4467 = vmatmul.mubr.msk.f32.vlgmr.msra.gmra.mxu1 %vm968_vm1, %v6047_v23  ;;  %4474 = vmatpush3.msra.mxu0 %v2131_v24  ;;  %v2353_v24 = vld [vmem:[#allocation16 + $0x70] sm:$0xff] }
 0x6f2   : > { %4481 = vmatpush3.msra.mxu1 %v2221_v25  ;;  %4475 = vmatprep.subr.mxu0 %v5438_v0  ;;  %v2350_v25 = vld [vmem:[#allocation16 + $0x58] sm:$0xff] }
 0x6f3   : > { %4482 = vmatprep.subr.mxu1 %v5438_v0  ;;  %4488 = vmatprep.mubr.msk.f32.mxu1 %vm5439_vm0, %v5438_v0 }
 0x6f4   : > { %v2219_v26 = vpop.permute.xlu0 %2218 }
 0x6f5   : > { %4483 = vmatpush3.msra.mxu1 %v2219_v26  ;;  %v2349_v26 = vld [vmem:[#allocation16 + $0x50] sm:$0xff] }
 0x6f6   : > { %4484 = vmatprep.subr.mxu1 %v5438_v0 }
 0x6f8   : > { %v2129_v28 = vpop.permute.xlu0 %2128 }
 0x6f9   : > { %4476 = vmatpush3.msra.mxu0 %v2129_v28  ;;  %v2346_v28 = vld [vmem:[#allocation16 + $0x38] sm:$0xff] }
 0x6fa   : > { %4478 = vmatmul.mubr.msk.f32.vlgmr.msra.gmra.mxu0 %vm968_vm1, %v6058_v27  ;;  %4491 = vmatprep.subr.mxu0 %v5438_v0 }
 0x6fb   : > { %4499 = vmatprep.mubr.msk.f32.mxu0 %vm5439_vm0, %v5438_v0  ;;  %4492 = vmatpush3.msra.mxu0 %v2334_v52 }
 0x6fc   : > { %v2217_v29 = vpop.permute.xlu0 %2216  ;;  %4493 = vmatprep.subr.mxu0 %v5438_v0 }
 0x6fd   : > { %4485 = vmatpush3.msra.mxu1 %v2217_v29  ;;  %v2345_v29 = vld [vmem:[#allocation16 + $0x30] sm:$0xff] }
 0x6fe   : > { %4486 = vmatprep.subr.mxu1 %v5438_v0 }
 0x6ff   : > { %4487 = vmatpush3.msra.mxu1 %v2215_v31  ;;  %v2342_v31 = vld [vmem:[#allocation16 + $0x18] sm:$0xff] }
 0x700   : > { %4489 = vmatmul.mubr.msk.f32.vlgmr.msra.gmra.mxu1 %vm968_vm1, %v6065_v30  ;;  %4502 = vmatprep.subr.mxu1 %v5438_v0 }
 0x701   : > { %4510 = vmatprep.mubr.msk.f32.mxu1 %vm5439_vm0, %v5438_v0  ;;  %4503 = vmatpush3.msra.mxu1 %v2338_v60 }
 0x702   : > { %4504 = vmatprep.subr.mxu1 %v5438_v0 }
 0x703   : > { %4505 = vmatpush3.msra.mxu1 %v2337_v61 }
 0x704   : > { %4506 = vmatprep.subr.mxu1 %v5438_v0 }
 0x705   : > { %4507 = vmatpush3.msra.mxu1 %v2336_v62 }
 0x706   : > { %4508 = vmatprep.subr.mxu1 %v5438_v0 }
 0x707   : > { %4509 = vmatpush3.msra.mxu1 %v2335_v63 }
 0x708   : > { %2597 = vmatprep.subr.mxu1 %v2354_v22 }
 0x730   : > { %v2027_v32 = vpop.f32.mrf.mxu0 }
 0x731   : > { %v2037_v37 = vadd.f32 %v4218_v36, %v2027_v32  ;;  %v2341_v32 = vld [vmem:[#allocation16 + $0x10] sm:$0xff] }
 0x732   : > { %v4457_v33 = vpop.f32.mrf.mxu0 }
 0x7b1   : > { %v2123_v34 = vpop.f32.mrf.mxu1 }
 0x7b2   : > { %v2127_v39 = vadd.f32 %v2123_v34, %v2037_v37 }
 0x7b3   : > { %v4468_v35 = vpop.f32.mrf.mxu1 }
 0x7ba   : > { %v2209_v38 = vpop.f32.mrf.mxu0 }
 0x7bb   : > { %v2213_v41 = vadd.f32 %v2209_v38, %v2127_v39 }
 0x7bc   : > { %v4479_v40 = vpop.f32.mrf.mxu0 }
 0x7c0   : > { %v2295_v42 = vpop.f32.mrf.mxu1 }
 0x7c1   : > { %v2299_v43 = vadd.f32 %v2295_v42, %v2213_v41 }
 0x7c2   : > { %v4490_v44 = vpop.f32.mrf.mxu1 }
 0x7c3   : > { %v2300_v45 = vadd.f32 %v2299_v43, %v5918_v9  ;;  %v2333_v9 = vld [vmem:[%s6420_s8 + $0x10] sm:$0xff] }
 0x7c4   : > { %4494 = vmatpush3.msra.mxu0 %v2333_v9 }
 0x7c5   : > { %v2303_v46 = vsel %vm968_vm1, %v2300_v45, 0.0  ;;  %4495 = vmatprep.subr.mxu0 %v5438_v0 }
 0x7c6   : > { %2304 = vadd.xlane.f32.xlu0 %v2303_v46  ;;  %4496 = vmatpush3.msra.mxu0 %v2332_v53 }
 0x7c7   : > { %4497 = vmatprep.subr.mxu0 %v5438_v0 }
 0x7c8   : > { %4498 = vmatpush3.msra.mxu0 %v2331_v54 }
 0x7c9   : > { %4500 = vmatmul.mubr.msk.f32.vlgmr.msra.gmra.mxu0 %vm968_vm1, %v6093_v59  ;;  %2526 = vmatprep.subr.mxu0 %v2352_v1 }
 0x7ca   : > { %2566 = vmatprep.mubr.f32.mxu0 %v5438_v0  ;;  %2527 = vmatpush1.msra.mxu0 %v2351_v2 }
 0x7cb   : > { %2528 = vmatprep.subr.mxu0 %v2348_v3 }
 0x7cc   : > { %2529 = vmatpush1.msra.mxu0 %v2347_v4 }
 0x7cd   : > { %2530 = vmatprep.subr.mxu0 %v2344_v5 }
 0x7ce   : > { %2531 = vmatpush1.msra.mxu0 %v2343_v6 }
 0x7cf   : > { %2532 = vmatprep.subr.mxu0 %v2340_v7 }
 0x7d0   : > { %2533 = vmatpush1.msra.mxu0 %v2339_v8 }
 0x7d1   : > { %4513 = vmatprep.subr.mxu0 %v5438_v0  ;;  %4226 = vmatmul.mubr.msk.f32.vlgmr.msra.gmra.mxu0 %vm968_vm1, %v6093_v59 }
 0x7d2   : > { %4515 = vmatprep.mubr.msk.f32.mxu0 %vm5439_vm0, %v5438_v0 }
 0x84f   : > { %v2305_v47 = vpop.xlane.xlu0 %2304 }
 0x850   : > { %v2307_v48 = vmul.f32 0.03125, %v2305_v47 }
 0x852   : > { %v2308_v49 = vsub.f32 %v2300_v45, %v2307_v48 }
 0x854   : > { %v2309_v50 = vmul.f32 %v2308_v49, %v2308_v49 }
 0x856   : > { %v2310_v51 = vsel %vm968_vm1, %v2309_v50, 0.0 }
 0x857   : > { %2311 = vadd.xlane.f32.xlu1 %v2310_v51 }
 0x889   : > { %v2425_v20 = vpop.f32.mrf.mxu0 }
 0x88a   : > { %2722 = vrot.lane.b32.xlu0 %v2425_v20, %s5441_s1  ;;  %2878 = vrot.lane.b32.xlu1 %v2425_v20, %s5442_s10 }
 0x88b   : > { %v4501_v21 = vpop.f32.mrf.mxu0  ;;  %4514 = vmatpush3.xpose.msk.msra.mxu0 %vm1254_vm2, %v2425_v20 }
 0x88c   : > { %4523 = vmatprep.subr.mxu0 %v5438_v0 }
 0x88e   : > { %2800 = vrot.lane.b32.xlu0 %v2425_v20, %s5440_s9 }
 0x891   : > { %v2568_v41 = vpop.f32.mrf.mxu0 }
 0x8e0   : > { %v2312_v10 = vpop.xlane.xlu1 %2311 }
 0x8e1   : > { %v2313_v11 = vmul.f32 0.03125, %v2312_v10 }
 0x8e3   : > { %v2314_v12 = vadd.f32 1e-05, %v2313_v11 }
 0x8e5   : > { %4859 = vrsqrt.f32 %v2314_v12 }
 0x8f2   : > { %v4860_v13 = vpop.eup %4859 }
 0x8f3   : > { %v2316_v15 = vmul.f32 %v4860_v13, %v2308_v49 }
 0x8f5   : > { %v2323_v18 = vmul.f32 %v4222_v14, %v2316_v15 }
 0x8f7   : > { %v6106_v19 = vadd.f32 %v4223_v17, %v2323_v18 }
 0x8f9   : > { %4511 = vmatmul.mubr.msk.f32.vlgmr.msra.gmra.mxu1 %vm968_vm1, %v6106_v19 }
 0x8fa   : > { %2637 = vmatprep.mubr.f32.mxu1 %v5438_v0  ;;  %2598 = vmatpush1.msra.mxu1 %v2353_v24 }
 0x8fb   : > { %2599 = vmatprep.subr.mxu1 %v2350_v25 }
 0x8fc   : > { %2600 = vmatpush1.msra.mxu1 %v2349_v26  ;;  %v2723_v33 = vpop.permute.xlu0 %2722  ;;  %v2879_v37 = vpop.permute.xlu1 %2878 }
 0x8fd   : > { %2601 = vmatprep.subr.mxu1 %v2346_v28 }
 0x8fe   : > { %2602 = vmatpush1.msra.mxu1 %v2345_v29 }
 0x8ff   : > { %2603 = vmatprep.subr.mxu1 %v2342_v31 }
 0x900   : > { %2604 = vmatpush1.msra.mxu1 %v2341_v32  ;;  %v2801_v35 = vpop.permute.xlu0 %2800 }
 0x901   : > { %4227 = vmatmul.mubr.msk.f32.vlgmr.msra.gmra.mxu1 %vm968_vm1, %v6093_v59  ;;  %4518 = vmatprep.subr.mxu1 %v5438_v0 }
 0x902   : > { %4520 = vmatprep.mubr.msk.f32.mxu1 %vm5439_vm0, %v5438_v0  ;;  %4519 = vmatpush3.xpose.msk.msra.mxu1 %vm1254_vm2, %v2723_v33 }
 0x903   : > { %4528 = vmatprep.subr.mxu1 %v5438_v0 }
 0x9b9   : > { %v2498_v34 = vpop.f32.mrf.mxu1 }
 0x9ba   : > { %2720 = vrot.lane.b32.xlu1 %v2498_v34, %s5441_s1  ;;  %2798 = vrot.lane.b32.xlu0 %v2498_v34, %s5440_s9 }
 0x9bb   : > { %4516 = vmatmul.mubr.msk.f32.vlgmr.msra.gmra.mxu0 %vm1254_vm2, %v2498_v34  ;;  %v4512_v36 = vpop.f32.mrf.mxu1 }
 0x9bc   : > { %4524 = vmatpush3.xpose.msk.msra.mxu0 %vm1254_vm2, %v2801_v35  ;;  %4525 = vmatprep.mubr.msk.f32.mxu0 %vm5439_vm0, %v5438_v0 }
 0x9bd   : > { %4533 = vmatprep.subr.mxu0 %v5438_v0 }
 0x9be   : > { %2876 = vrot.lane.b32.xlu1 %v2498_v34, %s5442_s10  ;;  %v4242_v34 = vld [vmem:[#allocation17] ss:$0 sm:$0xff] }
 0xa2c   : > { %v2721_v38 = vpop.permute.xlu1 %2720  ;;  %v2799_v39 = vpop.permute.xlu0 %2798 }
 0xa2d   : > { %4521 = vmatmul.mubr.msk.f32.vlgmr.msra.gmra.mxu1 %vm1254_vm2, %v2721_v38  ;;  %4526 = vmatmul.mubr.msk.f32.vlgmr.msra.gmra.mxu0 %vm1254_vm2, %v2799_v39 }
 0xa2e   : > { %4529 = vmatpush3.xpose.msk.msra.mxu1 %vm1254_vm2, %v2879_v37  ;;  %4530 = vmatprep.mubr.msk.f32.mxu1 %vm5439_vm0, %v5438_v0 }
 0xa2f   : > { %4544 = vmatprep.subr.mxu1 %v5438_v0  ;;  %4534 = vmatpush3.msra.mxu0 %v5975_v55  ;;  %v2570_v55 = vpop.f32.mrf.mxu0 }
 0xa30   : > { %v2877_v40 = vpop.permute.xlu1 %2876  ;;  %4535 = vmatprep.subr.mxu0 %v5438_v0  ;;  %4541 = vmatprep.mubr.msk.f32.mxu0 %vm5439_vm0, %v5438_v0 }
 0xa31   : > { %4531 = vmatmul.mubr.msk.f32.vlgmr.msra.gmra.mxu1 %vm1254_vm2, %v2877_v40  ;;  %4536 = vmatpush3.msra.mxu0 %v5980_v56  ;;  %v2639_v56 = vpop.f32.mrf.mxu1 }
 0xa32   : > { %4545 = vmatpush3.msra.mxu1 %v2568_v41  ;;  %4537 = vmatprep.subr.mxu0 %v5438_v0 }
 0xa33   : > { %4538 = vmatpush3.msra.mxu0 %v5987_v57  ;;  %4546 = vmatprep.mubr.msk.f32.mxu1 %vm5439_vm0, %v5438_v0  ;;  %v2641_v44 = vpop.f32.mrf.mxu1 }
 0xa34   : > { %4539 = vmatprep.subr.mxu0 %v5438_v0  ;;  %4549 = vmatprep.subr.mxu1 %v5438_v0 }
 0xa35   : > { %4540 = vmatpush3.msra.mxu0 %v5994_v58 }
 0xa36   : > { %4554 = vmatprep.subr.mxu0 %v5438_v0 }
 0xa7b   : > { %v2716_v42 = vpop.f32.mrf.mxu0 }
 0xa7d   : > { %v4517_v43 = vpop.f32.mrf.mxu0 }
 0xaed   : > { %v2794_v45 = vpop.f32.mrf.mxu1  ;;  %v2872_v46 = vpop.f32.mrf.mxu0 }
 0xaee   : > { %2955 = vrot.lane.b32.xlu0 %v2794_v45, %s6421_s17  ;;  %2959 = vrot.lane.b32.xlu1 %v2872_v46, %s6422_s15  ;;  %s5449_s15 = smov [#allocation29]  }
 0xaef   : > { %v4522_v57 = vpop.f32.mrf.mxu1  ;;  %v4527_v47 = vpop.f32.mrf.mxu0  ;;  %s5319_s2 = sshll.u32 %s5449_s15, 4  ;;  %s5320_s2 = int_to_ptr.vmem [resolvable:$false] %s5319_s2 }
 0xaf0   : > { %v3708_v57 = vld [vmem:[#allocation25 + $0x18] sm:$0xff]  ;;  %v3707_v47 = vld [vmem:[#allocation25 + $0x10] sm:$0xff] }
 0xaf1   : > { %v2950_v48 = vpop.f32.mrf.mxu1 }
 0xaf2   : > { %2963 = vrot.lane.b32.xlu0 %v2950_v48, %s6423_s13  ;;  %v3706_v48 = vld [vmem:[#allocation25 + $0x8] sm:$0xff]  ;;  %s4255_s13 = sshll.u32 %s5586_s23, 7  ;;  %s5321_s23 = scalar_lea.vmem %s5320_s2, 256 }
 0xaf3   : > { %v4532_v49 = vpop.f32.mrf.mxu1  ;;  %s3922_s5 = scalar_lea.hbm %s6428_s26, %s4255_s13 }
 0xaf4   : > { %v3797_v49 = vld [vmem:[%s6427_s14 + $0x38] sm:$0xff] }
 0xb60   : > { %v2956_v58 = vpop.permute.xlu0 %2955  ;;  %v2960_v51 = vpop.permute.xlu1 %2959 }
 0xb61   : > { %v2966_v50 = vsel %vm1254_vm2, %v2716_v42, %v2956_v58  ;;  %v3796_v58 = vld [vmem:[%s6427_s14 + $0x30] sm:$0xff] }
 0xb62   : > { %v2967_v52 = vsel %vm1578_vm3, %v2966_v50, %v2960_v51  ;;  %v3795_v50 = vld [vmem:[%s6427_s14 + $0x28] sm:$0xff]  ;;  %v3794_v51 = vld [vmem:[%s6427_s14 + $0x20] sm:$0xff] }
 0xb64   : > { %v2964_v9 = vpop.permute.xlu0 %2963 }
 0xb65   : > { %v2968_v53 = vsel %vm1580_vm4, %v2967_v52, %v2964_v9  ;;  %v3793_v52 = vld [vmem:[%s6427_s14 + $0x18] sm:$0xff] }
 0xb66   : > { %v2969_v54 = vsel %vm968_vm1, %v2968_v53, -inf }
 0xb67   : > { %2970 = vmax.xlane.f32.xlu1 %v2969_v54 }
 0xbf0   : > { %v2971_v59 = vpop.xlane.xlu1 %2970 }
 0xbf1   : > { %v2972_v60 = vsub.f32 %v2968_v53, %v2971_v59 }
 0xbf3   : > { %v2973_v61 = vmul.f32 1.442695, %v2972_v60  ;;  %v4246_v60 = vld [vmem:[#allocation19] ss:$0 sm:$0xff] }
 0xbf5   : > { %4861 = vpow2.f32 %v2973_v61 }
 0xc02   : > { %v4862_v62 = vpop.eup %4861 }
 0xc03   : > { %4542 = vmatmul.mubr.msk.f32.vlgmr.msra.gmra.mxu0 %vm968_vm1, %v4862_v62 }
 0xc04   : > { %4555 = vmatpush3.msra.mxu0 %v2639_v56  ;;  %4556 = vmatprep.mubr.msk.f32.mxu0 %vm5439_vm0, %v5438_v0 }
 0xc05   : > { %4564 = vmatprep.subr.mxu0 %v5438_v0 }
 0xcc3   : > { %v3044_v63 = vpop.f32.mrf.mxu0 }
 0xcc4   : > { %4863 = vrcp.f32 %v3044_v63 }
 0xcc5   : > { %v4543_v1 = vpop.f32.mrf.mxu0 }
 0xcd1   : > { %v4864_v2 = vpop.eup %4863 }
 0xcd2   : > { %v3049_v3 = vmul.f32 %v4864_v2, %v4862_v62  ;;  %v4247_v62 = vld [vmem:[#allocation20] ss:$0 sm:$0xff]  ;;  %v3792_v2 = vld [vmem:[%s6427_s14 + $0x10] sm:$0xff] }
 0xcd4   : > { %3123 = vrot.lane.b32.xlu0 %v3049_v3, %s5441_s1  ;;  %4547 = vmatmul.mubr.msk.f32.vlgmr.msra.gmra.mxu1 %vm1254_vm2, %v3049_v3  ;;  %s6425_s1 = smov 32  }
 0xcd5   : > { %4550 = vmatpush3.msra.mxu1 %v2570_v55  ;;  %4551 = vmatprep.mubr.msk.f32.mxu1 %vm5439_vm0, %v5438_v0 }
 0xcd6   : > { %4559 = vmatprep.subr.mxu1 %v5438_v0 }
 0xcd8   : > { %3271 = vrot.lane.b32.xlu0 %v3049_v3, %s5442_s10  ;;  %s6426_s10 = smov 64  }
 0xcdc   : > { %3197 = vrot.lane.b32.xlu0 %v3049_v3, %s5440_s9  ;;  %s6424_s9 = smov 96   ;;  %v3791_v3 = vld [vmem:[%s6427_s14 + $0x8] sm:$0xff] }
 0xd46   : > { %v3124_v4 = vpop.permute.xlu0 %3123 }
 0xd47   : > { %4552 = vmatmul.mubr.msk.f32.vlgmr.msra.gmra.mxu1 %vm1254_vm2, %v3124_v4  ;;  %v3790_v4 = vld [vmem:[%s6427_s14] sm:$0xff] }
 0xd48   : > { %4560 = vmatpush3.msra.mxu1 %v2641_v44  ;;  %4561 = vmatprep.mubr.msk.f32.mxu1 %vm5439_vm0, %v5438_v0 }
 0xd49   : > { %4575 = vmatprep.subr.mxu1 %v5438_v0 }
 0xd4a   : > { %v3272_v5 = vpop.permute.xlu0 %3271 }
 0xd4b   : > { %4562 = vmatmul.mubr.msk.f32.vlgmr.msra.gmra.mxu1 %vm1254_vm2, %v3272_v5  ;;  %v4248_v5 = vld [vmem:[#allocation26] ss:$0 sm:$0xff] }
 0xd4c   : > { %4583 = vmatprep.mubr.msk.f32.mxu1 %vm5439_vm0, %v5438_v0 }
 0xd4e   : > { %v3198_v6 = vpop.permute.xlu0 %3197 }
 0xd4f   : > { %4557 = vmatmul.mubr.msk.f32.vlgmr.msra.gmra.mxu0 %vm1254_vm2, %v3198_v6 }
 0xd50   : > { %4572 = vmatprep.mubr.msk.f32.mxu0 %vm5439_vm0, %v5438_v0 }
 0xd94   : > { %v3119_v7 = vpop.f32.mrf.mxu1 }
 0xd95   : > { %3426 = vrot.lane.b32.xlu0 %v3119_v7, %s6424_s9 }
 0xd96   : > { %v4548_v8 = vpop.f32.mrf.mxu1 }
 0xe07   : > { %v3193_v10 = vpop.f32.mrf.mxu1  ;;  %v3427_v17 = vpop.permute.xlu0 %3426 }
 0xe09   : > { %v4553_v11 = vpop.f32.mrf.mxu1 }
 0xe0a   : > { %v4250_v11 = vld [vmem:[#allocation28] ss:$0 sm:$0xff] }
 0xe0b   : > { %v3341_v12 = vpop.f32.mrf.mxu1 }
 0xe0c   : > { %3598 = vrot.lane.b32.xlu1 %v3341_v12, %s6425_s1  ;;  %4565 = vmatpush3.msra.mxu0 %v3341_v12 }
 0xe0d   : > { %v4563_v13 = vpop.f32.mrf.mxu1  ;;  %4566 = vmatprep.subr.mxu0 %v5438_v0 }
 0xe0f   : > { %v3267_v14 = vpop.f32.mrf.mxu0 }
 0xe10   : > { %3592 = vrot.lane.b32.xlu1 %v3119_v7, %s6425_s1  ;;  %3430 = vrot.lane.b32.xlu0 %v3267_v14, %s6424_s9 }
 0xe11   : > { %4567 = vmatpush3.msra.mxu0 %v3267_v14  ;;  %v4558_v15 = vpop.f32.mrf.mxu0 }
 0xe12   : > { %4568 = vmatprep.subr.mxu0 %v5438_v0 }
 0xe13   : > { %4569 = vmatpush3.msra.mxu0 %v3193_v10 }
 0xe14   : > { %4570 = vmatprep.subr.mxu0 %v5438_v0  ;;  %3428 = vrot.lane.b32.xlu0 %v3193_v10, %s6424_s9 }
 0xe15   : > { %4571 = vmatpush3.msra.mxu0 %v3119_v7 }
 0xe16   : > { %4586 = vmatprep.subr.mxu0 %v5438_v0  ;;  %4573 = vmatmul.mubr.msk.f32.vlgmr.msra.gmra.mxu0 %vm968_vm1, %v6027_v16 }
 0xe17   : > { %4594 = vmatprep.mubr.msk.f32.mxu0 %vm5439_vm0, %v5438_v0 }
 0xe18   : > { %3513 = vrot.lane.b32.xlu0 %v3267_v14, %s6426_s10 }
 0xe1c   : > { %3432 = vrot.lane.b32.xlu0 %v3341_v12, %s6424_s9  ;;  %s932_s9 = scalar_lea.vmem [#allocation29], %s5836_s25 }
 0xe20   : > { %3515 = vrot.lane.b32.xlu0 %v3341_v12, %s6426_s10 }
 0xe24   : > { %3511 = vrot.lane.b32.xlu0 %v3193_v10, %s6426_s10 }
 0xe28   : > { %3596 = vrot.lane.b32.xlu0 %v3267_v14, %s6425_s1 }
 0xe2c   : > { %3509 = vrot.lane.b32.xlu0 %v3119_v7, %s6426_s10 }
 0xe30   : > { %3594 = vrot.lane.b32.xlu0 %v3193_v10, %s6425_s1  ;;  %s3924_s1 = sshll.u32 %s932_s9, 4  ;;  %s3925_s1 = int_to_ptr.vmem [resolvable:$true] %s3924_s1 }
 0xe31   : > { %s5315_s17 = scalar_lea.vmem %s3925_s1, 128  ;;  %p5322_p4 = scmp.lt.s32.totalorder %s3925_s1, %s5320_s2 }
 0xe32   : > { %p5316_p10 = scmp.ne.s32.totalorder %s3925_s1, %s5315_s17  ;;  %p5323_p13 = scmp.lt.s32.totalorder %s5321_s23, %s5315_s17 }
 0xe34   : > { %p5317_p11 = pnand %p5316_p10, %p6429_p9  ;;  %p5324_p2 = por %p5323_p13, %p5322_p4 }
 0xe36   : > { %p5318_p1 = pneg %p5317_p11 }
 0xe38   : > { %p5325_p5 = pnand %p5324_p2, %p5318_p1 }
 0xe7e   : > { %v3599_v25 = vpop.permute.xlu1 %3598 }
 0xe82   : > { %v3431_v18 = vpop.permute.xlu0 %3430  ;;  %v3593_v29 = vpop.permute.xlu1 %3592 }
 0xe86   : > { %v3429_v16 = vpop.permute.xlu0 %3428 }
 0xe8a   : > { %v3514_v20 = vpop.permute.xlu0 %3513 }
 0xe8e   : > { %v3433_v21 = vpop.permute.xlu0 %3432 }
 0xe8f   : > { %4576 = vmatpush3.msra.mxu1 %v3433_v21 }
 0xe90   : > { %4577 = vmatprep.subr.mxu1 %v5438_v0 }
 0xe91   : > { %4578 = vmatpush3.msra.mxu1 %v3431_v18 }
 0xe92   : > { %4579 = vmatprep.subr.mxu1 %v5438_v0  ;;  %v3516_v22 = vpop.permute.xlu0 %3515 }
 0xe93   : > { %4580 = vmatpush3.msra.mxu1 %v3429_v16  ;;  %4587 = vmatpush3.msra.mxu0 %v3516_v22 }
 0xe94   : > { %4581 = vmatprep.subr.mxu1 %v5438_v0  ;;  %4588 = vmatprep.subr.mxu0 %v5438_v0 }
 0xe95   : > { %4582 = vmatpush3.msra.mxu1 %v3427_v17  ;;  %4589 = vmatpush3.msra.mxu0 %v3514_v20 }
 0xe96   : > { %4597 = vmatprep.subr.mxu1 %v5438_v0  ;;  %v3512_v24 = vpop.permute.xlu0 %3511  ;;  %4590 = vmatprep.subr.mxu0 %v5438_v0 }
 0xe97   : > { %4584 = vmatmul.mubr.msk.f32.vlgmr.msra.gmra.mxu1 %vm968_vm1, %v6047_v23  ;;  %4591 = vmatpush3.msra.mxu0 %v3512_v24 }
 0xe98   : > { %4598 = vmatpush3.msra.mxu1 %v3599_v25  ;;  %4592 = vmatprep.subr.mxu0 %v5438_v0 }
 0xe99   : > { %4599 = vmatprep.subr.mxu1 %v5438_v0  ;;  %4605 = vmatprep.mubr.msk.f32.mxu1 %vm5439_vm0, %v5438_v0 }
 0xe9a   : > { %v3597_v26 = vpop.permute.xlu0 %3596 }
 0xe9b   : > { %4600 = vmatpush3.msra.mxu1 %v3597_v26 }
 0xe9c   : > { %4601 = vmatprep.subr.mxu1 %v5438_v0 }
 0xe9e   : > { %v3510_v28 = vpop.permute.xlu0 %3509 }
 0xe9f   : > { %4593 = vmatpush3.msra.mxu0 %v3510_v28  ;;  %v4252_v28 = vld [vmem:[#allocation22] ss:$0 sm:$0xff] }
 0xea0   : > { %4595 = vmatmul.mubr.msk.f32.vlgmr.msra.gmra.mxu0 %vm968_vm1, %v6058_v27  ;;  %4608 = vmatprep.subr.mxu0 %v5438_v0 }
 0xea1   : > { %4616 = vmatprep.mubr.msk.f32.mxu0 %vm5439_vm0, %v5438_v0  ;;  %4609 = vmatpush3.msra.mxu0 %v3708_v57 }
 0xea2   : > { %v3595_v23 = vpop.permute.xlu0 %3594  ;;  %4610 = vmatprep.subr.mxu0 %v5438_v0 }
 0xea3   : > { %4602 = vmatpush3.msra.mxu1 %v3595_v23  ;;  %4611 = vmatpush3.msra.mxu0 %v3707_v47 }
 0xea4   : > { %4603 = vmatprep.subr.mxu1 %v5438_v0  ;;  %4612 = vmatprep.subr.mxu0 %v5438_v0 }
 0xea5   : > { %4604 = vmatpush3.msra.mxu1 %v3593_v29  ;;  %4613 = vmatpush3.msra.mxu0 %v3706_v48  ;;  %v4253_v29 = vld [vmem:[#allocation23] ss:$0 sm:$0xff] }
 0xea6   : > { %4606 = vmatmul.mubr.msk.f32.vlgmr.msra.gmra.mxu1 %vm968_vm1, %v6065_v30  ;;  %4619 = vmatprep.subr.mxu1 %v5438_v0 }
 0xea7   : > { %4635 = vmatprep.mubr.msk.f32.mxu1 %vm5439_vm0, %v5438_v0  ;;  %4614 = vmatprep.subr.mxu0 %v5438_v0 }
 0xea8   : > { %4620 = vmatpush3.msra.mxu1 %v3797_v49 }
 0xea9   : > { %4621 = vmatprep.subr.mxu1 %v5438_v0 }
 0xeaa   : > { %4622 = vmatpush3.msra.mxu1 %v3796_v58 }
 0xeab   : > { %4623 = vmatprep.subr.mxu1 %v5438_v0 }
 0xeac   : > { %4624 = vmatpush3.msra.mxu1 %v3795_v50 }
 0xead   : > { %4625 = vmatprep.subr.mxu1 %v5438_v0 }
 0xeae   : > { %4626 = vmatpush3.msra.mxu1 %v3794_v51 }
 0xeaf   : > { %4627 = vmatprep.subr.mxu1 %v5438_v0 }
 0xeb0   : > { %4628 = vmatpush3.msra.mxu1 %v3793_v52 }
 0xeb1   : > { %4629 = vmatprep.subr.mxu1 %v5438_v0 }
 0xeb2   : > { %4630 = vmatpush3.msra.mxu1 %v3792_v2 }
 0xeb3   : > { %4631 = vmatprep.subr.mxu1 %v5438_v0 }
 0xeb4   : > { %4632 = vmatpush3.msra.mxu1 %v3791_v3 }
 0xeb5   : > { %4633 = vmatprep.subr.mxu1 %v5438_v0 }
 0xeb6   : > { %4634 = vmatpush3.msra.mxu1 %v3790_v4 }
 0xed6   : > { %v3411_v27 = vpop.f32.mrf.mxu0 }
 0xed7   : > { %v3421_v35 = vadd.f32 %v4242_v34, %v3411_v27 }
 0xed8   : > { %v4574_v31 = vpop.f32.mrf.mxu0 }
 0xf57   : > { %v3504_v32 = vpop.f32.mrf.mxu1 }
 0xf58   : > { %v3508_v37 = vadd.f32 %v3504_v32, %v3421_v35 }
 0xf59   : > { %v4585_v33 = vpop.f32.mrf.mxu1 }
 0xf60   : > { %v3587_v36 = vpop.f32.mrf.mxu0 }
 0xf61   : > { %v3591_v39 = vadd.f32 %v3587_v36, %v3508_v37 }
 0xf62   : > { %v4596_v38 = vpop.f32.mrf.mxu0 }
 0xf66   : > { %v3670_v40 = vpop.f32.mrf.mxu1 }
 0xf67   : > { %v3674_v41 = vadd.f32 %v3670_v40, %v3591_v39 }
 0xf68   : > { %v4607_v55 = vpop.f32.mrf.mxu1 }
 0xf69   : > { %v3675_v30 = vadd.f32 %v3674_v41, %v6106_v19  ;;  %v3705_v19 = vld [vmem:[#allocation25] sm:$0xff] }
 0xf6a   : > { %4615 = vmatpush3.msra.mxu0 %v3705_v19 }
 0xf6b   : > { %v3678_v42 = vsel %vm968_vm1, %v3675_v30, 0.0 }
 0xf6c   : > { %3679 = vadd.xlane.f32.xlu0 %v3678_v42 }
 0xff5   : > { %v3680_v43 = vpop.xlane.xlu0 %3679 }
 0xff6   : > { %v3681_v56 = vmul.f32 0.03125, %v3680_v43 }
 0xff8   : > { %v3682_v44 = vsub.f32 %v3675_v30, %v3681_v56 }
 0xffa   : > { %v3683_v45 = vmul.f32 %v3682_v44, %v3682_v44 }
 0xffc   : > { %v3684_v46 = vsel %vm968_vm1, %v3683_v45, 0.0 }
 0xffd   : > { %3685 = vadd.xlane.f32.xlu1 %v3684_v46 }
0x1086   : > { %v3686_v9 = vpop.xlane.xlu1 %3685 }
0x1087   : > { %v3687_v53 = vmul.f32 0.03125, %v3686_v9 }
0x1089   : > { %v3688_v54 = vadd.f32 1e-05, %v3687_v53 }
0x108b   : > { %4865 = vrsqrt.f32 %v3688_v54 }
0x1098   : > { %v4866_v59 = vpop.eup %4865 }
0x1099   : > { %v3690_v61 = vmul.f32 %v4866_v59, %v3682_v44 }
0x109b   : > { %v3697_v63 = vmul.f32 %v4246_v60, %v3690_v61 }
0x109d   : > { %v3704_v1 = vadd.f32 %v4247_v62, %v3697_v63 }
0x109f   : > { %4617 = vmatmul.mubr.msk.f32.vlgmr.msra.gmra.mxu0 %vm968_vm1, %v3704_v1 }
0x115f   : > { %v3785_v6 = vpop.f32.mrf.mxu0 }
0x1160   : > { %v3786_v7 = vadd.f32 %v4248_v5, %v3785_v6 }
0x1161   : > { %v4618_v8 = vpop.f32.mrf.mxu0 }
0x1162   : > { %v3789_v10 = vmax.f32 %v3786_v7, 0.0 }
0x1164   : > { %4636 = vmatmul.mubr.msk.f32.vlgmr.msra.gmra.mxu1 %vm3805_vm5, %v3789_v10 }
0x1224   : > { %v3875_v12 = vpop.f32.mrf.mxu1 }
0x1225   : > { %v3876_v13 = vadd.f32 %v4250_v11, %v3875_v12 }
0x1226   : > { %v4637_v14 = vpop.f32.mrf.mxu1 }
0x1227   : > { %v3879_v15 = vadd.f32 %v3876_v13, %v3704_v1 }
0x1229   : > { %v3882_v17 = vsel %vm968_vm1, %v3879_v15, 0.0 }
0x122a   : > { %3883 = vadd.xlane.f32.xlu0 %v3882_v17 }
0x12b3   : > { %v3884_v18 = vpop.xlane.xlu0 %3883 }
0x12b4   : > { %v3885_v0 = vmul.f32 0.03125, %v3884_v18 }
0x12b6   : > { %v3886_v16 = vsub.f32 %v3879_v15, %v3885_v0 }
0x12b8   : > { %v3887_v20 = vmul.f32 %v3886_v16, %v3886_v16 }
0x12ba   : > { %v3888_v21 = vsel %vm968_vm1, %v3887_v20, 0.0 }
0x12bb   : > { %3889 = vadd.xlane.f32.xlu0 %v3888_v21 }
0x1344   : > { %v3890_v22 = vpop.xlane.xlu0 %3889 }
0x1345   : > { %v3891_v24 = vmul.f32 0.03125, %v3890_v22 }
0x1347   : > { %v3892_v25 = vadd.f32 1e-05, %v3891_v24 }
0x1349   : > { %4867 = vrsqrt.f32 %v3892_v25 }
0x1356   : > { %v4868_v26 = vpop.eup %4867 }
0x1357   : > { %v3894_v23 = vmul.f32 %v4868_v26, %v3886_v16 }
0x1359   : > { %v3901_v27 = vmul.f32 %v4252_v28, %v3894_v23 }
0x135b   : > { %v3908_v31 = vadd.f32 %v4253_v29, %v3901_v27 }
0x135d   : > { %3909 = vst.msk [vmem:[%s932_s9] sm:$0xff] %vm968_vm1, %v3908_v31 }
0x135e   : > { %5328 = shalt.err (!%p5325_p5)
}
0x135f   : > { %s5329_s25 = scalar_lea.hbm %s3922_s5, 128  ;;  %s5333_s9 = scalar_lea.hbm %s6428_s26, 256 }
0x1360   : > { %p5330_p8 = scmp.ne.s32.totalorder %s3922_s5, %s5329_s25  ;;  %p5334_p7 = scmp.lt.s32.totalorder %s3922_s5, %s6428_s26 }
0x1361   : > { %p5335_p3 = scmp.lt.s32.totalorder %s5333_s9, %s5329_s25 }
0x1362   : > { %p5331_p12 = pnand %p5330_p8, %p6429_p9 }
0x1363   : > { %p5336_p0 = por %p5335_p3, %p5334_p7 }
0x1364   : > { %p5332_p6 = pneg %p5331_p12 }
0x1366   : > { %p5337_p10 = pnand %p5336_p0, %p5332_p6 }
0x1368   : > { %5340 = shalt.err (!%p5337_p10)
}
0x1369   : > { %4702 = dma.vmem_to_hbm [thread:$0]  (%p6429_p9), %s3925_s1, 128, %s3922_s5, %s3911_s27  }
0x136a PF: > { %s3936_s2 = sand.u32 1, %s5403_s3   ;;  %p6430_p11 = scmp.ne.s32.totalorder %s6395_s24, 0 }
0x136b   : > { %p6431_p1 = scmp.ge.s32.totalorder %s5415_s30, 2  ;;  %s3937_s17 = scalar_lea.sflag [#allocation4], %s3936_s2 }
0x136d   : > { %p4758_p4 = pnand %p6431_p1, %p6430_p11 }
0x136f   : > { %p4759_p13 = pneg %p4758_p4 }
0x1371   : > { %5398 = dma.done.wait (%p4759_p13), %s3937_s17, 128  }
0x1372   : > { %5400 = vsyncadd (%p4759_p13), %s3937_s17, 4294967168  ;;  %p45_p2 = scmp.ge.s32.totalorder %s5742_s6, 4   ;;  %s6432_s3 = smov %s5407_s28 }
0x1373   : > { %s6433_s28 = smov %s5411_s29  ;;  %s6434_s29 = smov %s5754_s0 }
0x1374   : > { %s6435_s30 = smov %s5742_s6  ;;  %47 = sbr.rel (!%p45_p2) target bundleno = 35 (0x23), region = 226 }
0x1379   :  { %3942 = vsyncpa [#allocation3], 1 }
0x137a   :  { %3944 = vsyncpa [#allocation3 + $0x1], 1 }
0x137b   :  { %3945 = vsyncpa [#allocation6], 1 }
0x137c   :  { %3947 = vsyncpa [#allocation6 + $0x1], 1 }
0x137d   :  { %3948 = vsyncpa [#allocation9], 1 }
0x137e   :  { %3949 = vsyncpa [#allocation12], 1 }
0x137f   :  { %3950 = vsyncpa [#allocation15], 1 }
0x1380   :  { %3951 = vsyncpa [#allocation18], 1 }
0x1381   :  { %3952 = vsyncpa [#allocation21], 1 }
0x1382   :  { %3953 = vsyncpa [#allocation24], 1 }
0x1383   :  { %3954 = vsyncpa [#allocation27], 1 }
0x1384   :  { %3955 = vsyncpa [#allocation4], 1 }
0x1385   :  { %3957 = vsyncpa [#allocation4 + $0x1], 1 }

</bundles_post_ra>
